<compile_context>
chip_gen: v7x
topology: tpu7x:2x2x1
jax: 0.10.0
libtpu: 0.0.40
codegen_flags: <defaults>
</compile_context>

<pallas_src>
import functools

import jax
import jax.numpy as jnp
from jax.experimental import pallas as pl
from jax.experimental.pallas import tpu as pltpu


# ----------------------------- config ---------------------------------------
WINDOW = 16    # sliding temporal window length (torch: for start in range(t - 16))
KSIZE = 3      # scaled-down stem kernel (real I3D stem uses 7)
STRIDE = 2     # stem stride (matches real I3D stem stride)
FEAT = 128     # scaled-down feature dim (real I3D: 1024)
               # TODO(synk): when the full stack is built, pack output channels so
               # N >= 256 per matmul on v6e/v7x (N=128 is already optimal on v5e).
BT_MAX = 64    # max temporal output positions per grid step


def _round_up(x, m):
    return (x + m - 1) // m * m


# ------------------------- Pallas kernel -------------------------------------
def _stem_kernel(x_ref, w_ref, b_ref, o_ref, *, hw_pad, hw_valid):
    """Fused conv-stem + bias + ReLU + spatial avg-pool for one (stream, t-block).

    x_ref: (1, BT*HWp, K)  temporally+spatially im2col'd frames, bf16
    w_ref: (1, K, F)       norm-folded conv weights (K = kT*kH*kW*C), bf16
    b_ref: (1, 1, F)       norm-folded bias, f32
    o_ref: (1, BT, F)      spatially pooled features, f32
    """
    bt, f = o_ref.shape[1], o_ref.shape[2]

    # single fused GEMM over all kT*kH*kW*C taps, bf16 operands / f32 accumulate
    acc = jnp.dot(x_ref[0], w_ref[0], preferred_element_type=jnp.float32)  # (M, F)
    bias = b_ref[0]                                                        # (1, F)
    act = jnp.maximum(acc + bias, 0.0)           # bias + ReLU, f32 epilogue (v5e-safe)

    # spatial average pool over the hw_valid real rows.  Padded spatial rows are
    # all-zero patches so each contributes exactly relu(bias); subtract that
    # analytically instead of materializing a (BT, HWp, F) mask.
    pooled = jnp.sum(act.reshape(bt, hw_pad, f), axis=1)                   # (BT, F)
    pooled = pooled - (hw_pad - hw_valid) * jnp.maximum(bias, 0.0)
    o_ref[0] = pooled * (1.0 / hw_valid)


# ------------------------- wrapper / glue ------------------------------------
def _im2col_clip(video):
    """(T, H, W, C) -> (T-k+1, HWo padded to mult of 8, k^3*C).

    Full-clip 3-D im2col with temporal stride 1: the stem is evaluated ONCE per
    temporal position over the whole clip and the 16-frame sliding windows just
    re-index the result afterwards.  Column order (dt, dh, dw, c) matches
    w.reshape(K, F).
    """
    T, H, W, C = video.shape
    oH = (H - KSIZE) // STRIDE + 1
    oW = (W - KSIZE) // STRIDE + 1
    oT = T - KSIZE + 1
    cols = []
    for dt in range(KSIZE):
        for dh in range(KSIZE):
            for dw in range(KSIZE):
                cols.append(video[dt:dt + oT,
                                  dh:dh + STRIDE * oH:STRIDE,
                                  dw:dw + STRIDE * oW:STRIDE, :])
    p = jnp.stack(cols, axis=3)                        # (oT, oH, oW, k^3, C)
    p = p.reshape(oT, oH * oW, KSIZE ** 3 * C)
    hw = oH * oW
    hw_pad = _round_up(hw, 8)                          # sublane-aligned spatial rows
    p = jnp.pad(p, ((0, 0), (0, hw_pad - hw), (0, 0)))
    return p, hw


def extract_features_both(rgb_raw, flow_raw, w_rgb, b_rgb, w_flow, b_flow):
    """Sliding-window InceptionI3d.extract_features stand-in for BOTH streams in
    a single pallas_call.

    rgb_raw:  (T, H, W, 3) raw pixels in [0, 255] (channels-last; normalization and
              the (C,T,H,W) transpose are folded away).
    flow_raw: (T, H, W, 2) raw flow values in [0, 255].
    Returns (features_rgb, features_flow), each (num_windows * oT, F).
    """
    T_total = rgb_raw.shape[0]
    NW = T_total - WINDOW                              # torch: range(t - 16)
    oT_win = (WINDOW - KSIZE) // STRIDE + 1            # temporal outputs per window

    # flow has 2 channels; zero-pad to 3 so both streams share one kernel / grid.
    flow_raw3 = jnp.pad(flow_raw, ((0, 0), (0, 0), (0, 0), (0, 1)))
    w_flow3 = jnp.pad(w_flow, ((0, 0), (0, 0), (0, 0), (0, 1), (0, 0)))

    C = rgb_raw.shape[-1]
    K = KSIZE ** 3 * C

    # fold the affine normalization into the conv parameters:
    #   conv(x*(2/255) - 1, W) + b == conv(x, (2/255)*W) + (b - sum(W))
    def fold(w, b):
        w_eff = (w * (2.0 / 255.0)).astype(jnp.bfloat16).reshape(K, FEAT)
        b_eff = (b - jnp.sum(w, axis=(0, 1, 2, 3))).astype(jnp.float32)
        return w_eff, b_eff.reshape(1, FEAT)

    w_r, b_r = fold(w_rgb, b_rgb)
    w_f, b_f = fold(w_flow3, b_flow)
    w_all = jnp.stack([w_r, w_f], axis=0)              # (2, K, F)   bf16
    b_all = jnp.stack([b_r, b_f], axis=0)              # (2, 1, F)   f32

    # one-shot im2col over the whole clip (temporal stride 1), both streams
    lhs_r, hw = _im2col_clip(rgb_raw)
    lhs_f, _ = _im2col_clip(flow_raw3)
    lhs_all = jnp.stack([lhs_r, lhs_f], axis=0).astype(jnp.bfloat16)  # (2, nT, HWp, K)

    n_t, hw_pad = lhs_all.shape[1], lhs_all.shape[2]
    bt = min(BT_MAX, _round_up(n_t, 8))
    n_blocks = pl.cdiv(n_t, bt)
    t_pad = n_blocks * bt
    lhs_all = jnp.pad(lhs_all, ((0, 0), (0, t_pad - n_t), (0, 0), (0, 0)))
    # flatten (T, HWp) -> M in the wrapper (free, contiguous) so the kernel's LHS
    # block is already (BT*HWp, K) and needs no in-kernel reshape/relayout.
    lhs_all = lhs_all.reshape(2, t_pad * hw_pad, K)

    out = pl.pallas_call(
        functools.partial(_stem_kernel, hw_pad=hw_pad, hw_valid=hw),
        out_shape=jax.ShapeDtypeStruct((2, t_pad, FEAT), jnp.float32),
        grid=(2, n_blocks),
        in_specs=[
            # per-step LHS: BT temporal positions x HWp spatial patches, fused K
            pl.BlockSpec((1, bt * hw_pad, K), lambda s, i: (s, i, 0)),
            # weights / bias stay resident per stream
            pl.BlockSpec((1, K, FEAT), lambda s, i: (s, 0, 0)),
            pl.BlockSpec((1, 1, FEAT), lambda s, i: (s, 0, 0)),
        ],
        out_specs=pl.BlockSpec((1, bt, FEAT), lambda s, i: (s, i, 0)),
        compiler_params=pltpu.CompilerParams(
            dimension_semantics=("parallel", "parallel"),
            # TODO(synk): size per generation (~48-56 MiB on v7x, up to ~96-112 MiB
            # on v5e/v6e) when BT / spatial tiles are scaled to real I3D size.
            vmem_limit_bytes=48 * 1024 * 1024),
    )(lhs_all, w_all, b_all)

    # gather per-window features: full-clip temporal position = start + STRIDE*t.
    # Padded temporal tail rows (>= n_t) hold relu(b) and are never gathered
    # (max idx = T_total - KSIZE - 1 < n_t).
    # TODO(synk): downstream consumers could index `out` directly instead of
    # materializing this ~oT-times redundant gathered copy.
    idx = (jnp.arange(NW)[:, None] + STRIDE * jnp.arange(oT_win)[None, :]).reshape(-1)
    return out[0][idx], out[1][idx]


def i3d_forward(frame_list, flow_frames, w_rgb, b_rgb, w_flow, b_flow):
    """Mirrors I3D.forward (minus the Tk GUI progress-bar plumbing).

    frame_list:  (T, H, W, 3) raw RGB pixels, float32 in [0, 255]
    flow_frames: (T, H, W, 2) raw flow values, float32 in [0, 255]
    """
    # TODO(synk): cv2 BGR->RGB flip, resize-if-small and CenterCrop(224) are image-IO
    # preprocessing with no Pallas hot path; inputs are assumed already cropped and
    # channel-ordered.  The x/255*2-1 normalization and the video_to_tensor
    # transpose are folded into the conv weights / channels-last layout.
    return extract_features_both(frame_list, flow_frames,
                                 w_rgb, b_rgb, w_flow, b_flow)


# -------------------------- pure-JAX reference (original semantics) ----------
def _ref_window_patches(x):
    T, H, W, C = x.shape
    oT = (T - KSIZE) // STRIDE + 1
    oH = (H - KSIZE) // STRIDE + 1
    oW = (W - KSIZE) // STRIDE + 1
    pats = []
    for dt in range(KSIZE):
        for dh in range(KSIZE):
            for dw in range(KSIZE):
                pats.append(x[dt:dt + STRIDE * oT:STRIDE,
                              dh:dh + STRIDE * oH:STRIDE,
                              dw:dw + STRIDE * oW:STRIDE, :])
    p = jnp.stack(pats, axis=3)                        # (oT, oH, oW, k^3, C)
    return p.reshape(oT, oH * oW, KSIZE ** 3 * C)


def _ref_extract_features(video_raw, w, b):
    video = video_raw * (2.0 / 255.0) - 1.0            # explicit normalization
    T_total, _, _, C = video.shape
    NW = T_total - WINDOW
    K = KSIZE ** 3 * C
    feats = []
    for s in range(NW):
        p = _ref_window_patches(video[s:s + WINDOW])
        y = jnp.einsum("thk,kf->thf", p, w.reshape(K, FEAT)) + b
        y = jnp.maximum(y, 0.0)
        feats.append(jnp.mean(y, axis=1))              # spatial avg pool
    return jnp.concatenate(feats, axis=0)              # (NW*oT, F)


# ------------------------------- main -----------------------------------------
if __name__ == "__main__":
    key = jax.random.PRNGKey(0)
    k1, k2, k3, k4, k5, k6 = jax.random.split(key, 6)

    T_total, H, W = 20, 16, 16          # 20 frames -> 4 sliding windows of 16
    frame_list = jax.random.uniform(k1, (T_total, H, W, 3),
                                    minval=0.0, maxval=255.0, dtype=jnp.float32)
    flow_frames = jax.random.uniform(k2, (T_total, H, W, 2),
                                     minval=0.0, maxval=255.0, dtype=jnp.float32)

    # synthetic I3D stem parameters (rgb: 3 in-channels, flow: 2 in-channels)
    w_rgb = 0.05 * jax.random.normal(k3, (KSIZE, KSIZE, KSIZE, 3, FEAT),
                                     dtype=jnp.float32)
    b_rgb = 0.01 * jax.random.normal(k4, (FEAT,), dtype=jnp.float32)
    w_flow = 0.05 * jax.random.normal(k5, (KSIZE, KSIZE, KSIZE, 2, FEAT),
                                      dtype=jnp.float32)
    b_flow = 0.01 * jax.random.normal(k6, (FEAT,), dtype=jnp.float32)

    feat_rgb, feat_flow = jax.jit(i3d_forward)(frame_list, flow_frames,
                                               w_rgb, b_rgb, w_flow, b_flow)
    jax.block_until_ready((feat_rgb, feat_flow))

    # correctness check against the original-semantics f32 reference
    ref_rgb = _ref_extract_features(frame_list, w_rgb, b_rgb)
    ref_flow = _ref_extract_features(flow_frames, w_flow, b_flow)
    NW = T_total - WINDOW
    oT = (WINDOW - KSIZE) // STRIDE + 1
    assert feat_rgb.shape == ref_rgb.shape == (NW * oT, FEAT)
    assert feat_flow.shape == ref_flow.shape == (NW * oT, FEAT)
    assert jnp.allclose(feat_rgb, ref_rgb, rtol=2e-2, atol=2e-2)
    assert jnp.allclose(feat_flow, ref_flow, rtol=2e-2, atol=2e-2)

    print("KERNEL_OK")
</pallas_src>

<mosaic_0001>
module attributes {stable_mosaic.version = 11 : i64} {
  func.func @_stem_kernel(%arg0: i32, %arg1: i32, %arg2: memref<1x1344x81xbf16, #tpu.memory_space<vmem>>, %arg3: memref<1x81x128xbf16, #tpu.memory_space<vmem>>, %arg4: memref<1x1x128xf32, #tpu.memory_space<vmem>>, %arg5: memref<1x24x128xf32, #tpu.memory_space<vmem>>) attributes {dimension_semantics = [#tpu.dimension_semantics<parallel>, #tpu.dimension_semantics<parallel>], iteration_bounds = array<i64: 2, 1>, scalar_prefetch = 0 : i64, scratch_operands = 0 : i64, tpu.core_type = #tpu.core_type<tc>, window_params = [{transform_indices = @transform_0, window_bounds = array<i64: 1, 1344, 81>}, {transform_indices = @transform_1, window_bounds = array<i64: 1, 81, 128>}, {transform_indices = @transform_2, window_bounds = array<i64: 1, 1, 128>}, {transform_indices = @transform_3, window_bounds = array<i64: 1, 24, 128>}]} {
    %c0 = arith.constant 0 : index
    %c0_0 = arith.constant 0 : index
    %c0_1 = arith.constant 0 : index
    %0 = vector.load %arg2[%c0, %c0_0, %c0_1] : memref<1x1344x81xbf16, #tpu.memory_space<vmem>>, vector<1x1344x81xbf16>
    %1 = vector.shape_cast %0 : vector<1x1344x81xbf16> to vector<1344x81xbf16>
    %c0_2 = arith.constant 0 : index
    %c0_3 = arith.constant 0 : index
    %c0_4 = arith.constant 0 : index
    %2 = vector.load %arg3[%c0_2, %c0_3, %c0_4] : memref<1x81x128xbf16, #tpu.memory_space<vmem>>, vector<1x81x128xbf16>
    %3 = vector.shape_cast %2 : vector<1x81x128xbf16> to vector<81x128xbf16>
    %cst = arith.constant dense<0.000000e+00> : vector<1344x128xf32>
    %4 = tpu.matmul %1, %3, %cst {dimension_numbers = #tpu.dot_dimension_numbers<[1], [0], [0], [1], [0, 0, 1, 1], [], []>} : vector<1344x81xbf16>, vector<81x128xbf16>, vector<1344x128xf32> -> vector<1344x128xf32>
    %c0_5 = arith.constant 0 : index
    %c0_6 = arith.constant 0 : index
    %c0_7 = arith.constant 0 : index
    %5 = vector.load %arg4[%c0_5, %c0_6, %c0_7] : memref<1x1x128xf32, #tpu.memory_space<vmem>>, vector<1x1x128xf32>
    %6 = vector.shape_cast %5 : vector<1x1x128xf32> to vector<1x128xf32>
    %7 = vector.broadcast %6 : vector<1x128xf32> to vector<1344x128xf32>
    %8 = arith.addf %4, %7 : vector<1344x128xf32>
    %cst_8 = arith.constant 0.000000e+00 : f32
    %9 = vector.broadcast %cst_8 : f32 to vector<1344x128xf32>
    %10 = arith.maximumf %8, %9 : vector<1344x128xf32>
    %11 = vector.shape_cast %10 : vector<1344x128xf32> to vector<24x56x128xf32>
    %cst_9 = arith.constant dense<0.000000e+00> : vector<24x128xf32>
    %12 = vector.multi_reduction <add>, %11, %cst_9 [1] : vector<24x56x128xf32> to vector<24x128xf32>
    %cst_10 = arith.constant 0.000000e+00 : f32
    %13 = vector.broadcast %cst_10 : f32 to vector<1x128xf32>
    %14 = arith.maximumf %6, %13 : vector<1x128xf32>
    %cst_11 = arith.constant 7.000000e+00 : f32
    %15 = vector.broadcast %cst_11 : f32 to vector<1x128xf32>
    %16 = arith.mulf %15, %14 : vector<1x128xf32>
    %17 = vector.broadcast %16 : vector<1x128xf32> to vector<24x128xf32>
    %18 = arith.subf %12, %17 : vector<24x128xf32>
    %cst_12 = arith.constant 0.0204081628 : f32
    %19 = vector.broadcast %cst_12 : f32 to vector<24x128xf32>
    %20 = arith.mulf %18, %19 : vector<24x128xf32>
    %c0_13 = arith.constant 0 : index
    %c0_14 = arith.constant 0 : index
    %c0_15 = arith.constant 0 : index
    %21 = vector.load %arg5[%c0_13, %c0_14, %c0_15] : memref<1x24x128xf32, #tpu.memory_space<vmem>>, vector<1x24x128xf32>
    %22 = vector.shape_cast %21 : vector<1x24x128xf32> to vector<24x128xf32>
    %23 = vector.shape_cast %20 : vector<24x128xf32> to vector<1x24x128xf32>
    tpu.vector_store %arg5[%c0_13, %c0_14, %c0_15], %23 {strides = array<i32>} : memref<1x24x128xf32, #tpu.memory_space<vmem>>, vector<1x24x128xf32>,
    return
  }
  func.func @transform_0(%arg0: i32, %arg1: i32) -> (i32, i32, i32) {
    %c0_i32 = arith.constant 0 : i32
    %c0_i32_0 = arith.constant 0 : i32
    return %arg0, %arg1, %c0_i32 : i32, i32, i32
  }
  func.func @transform_1(%arg0: i32, %arg1: i32) -> (i32, i32, i32) {
    %c0_i32 = arith.constant 0 : i32
    %c0_i32_0 = arith.constant 0 : i32
    %c0_i32_1 = arith.constant 0 : i32
    return %arg0, %c0_i32, %c0_i32_0 : i32, i32, i32
  }
  func.func @transform_2(%arg0: i32, %arg1: i32) -> (i32, i32, i32) {
    %c0_i32 = arith.constant 0 : i32
    %c0_i32_0 = arith.constant 0 : i32
    %c0_i32_1 = arith.constant 0 : i32
    return %arg0, %c0_i32, %c0_i32_0 : i32, i32, i32
  }
  func.func @transform_3(%arg0: i32, %arg1: i32) -> (i32, i32, i32) {
    %c0_i32 = arith.constant 0 : i32
    %c0_i32_0 = arith.constant 0 : i32
    return %arg0, %arg1, %c0_i32 : i32, i32, i32
  }
}

</mosaic_0001>

<bundles_post_ra>
// kernel: i3d_forward.1
= control target key start
LH: loop header
LB: loop body
LE: loop exit
PB: predicated region body
PF: predicated region fallthrough
CT: control target
= control target key end

     0   :  { %s3176_s12 = smov 0   ;;  %s3178_s13 = smov 0   ;;  %s3702_s0 = inlined_call_operand.vmem [shape: bf16[2,1344,81], index: 0, kind: input, shape index: {}]   ;;  %s3703_s1 = inlined_call_operand.vmem [shape: bf16[2,81,128], index: 1, kind: input, shape index: {}]   ;;  %s3704_s2 = inlined_call_operand.vmem [shape: f32[2,1,128], index: 2, kind: input, shape index: {}]   ;;  %s3705_s3 = inlined_call_operand.vmem [shape: f32[2,24,128], index: 3, kind: output, shape index: {}]  }
   0x1   :  { %s3180_s14 = smov 0  }
   0x2 LB: > { %s25_s15 = sadd.s32 1, %s3149_s13  ;;  %p2551_p0 = scmp.ge.s32.totalorder %s3153_s14, 1  ;;  %s3153_s14 = sphi %s3180_s14, %s13_s14   ;;  %s3149_s13 = sphi %s3178_s13, %s3707_s13   ;;  %s3145_s12 = sphi %s3176_s12, %s3706_s12  }
   0x3   : > { %p27_p1 = scmp.ge.s32.totalorder %s25_s15, 2  ;;  %p176_p2 = scmp.lt.s32.totalorder %s3153_s14, 3 }
   0x5   : > { %s3709_s15 = smov (%p27_p1, %s25_s15), 0  ;;  %p177_p3 = pnand %p2551_p0, %p176_p2 }
   0x6   : > { %p217_p4 = scmp.lt.s32.totalorder (!%p177_p3), %s3145_s12, 1  ;;  %vm884_vm0 = vcmask (!%p177_p3), 662528   ;;  %vm1137_vm1 = vcmask (!%p177_p3), 1040384   ;;  %v3155_v8 = vmov (!%p177_p3), 0   ;;  %vm2385_vm2 = vcmask (!%p177_p3), 1041409  }
   0x7   : > { %180 = sbr.rel (%p177_p3) target bundleno = 462 (0x1ce), region = 32  ;;  %v1139_v9 = vsel (!%p177_p3), %vm1137_vm1, 65535, %v3155_v8  ;;  %vm2388_vm3 = vcmask (!%p177_p3), 1042434   ;;  %vm2391_vm4 = vcmask (!%p177_p3), 1043459   ;;  %vm2394_vm5 = vcmask (!%p177_p3), 1044484  }
   0x8   : > { %vm2397_vm6 = vcmask (!%p177_p3), 1045509   ;;  %vm2400_vm7 = vcmask (!%p177_p3), 1046534   ;;  %vm2403_vm8 = vcmask (!%p177_p3), 1047559  }
   0xe   : > { %s3711_s12 = smov (!%p217_p4, %s3145_s12), 1 }
   0xf   : > { %s3013_s16 = smul.u32 672, %s3711_s12  ;;  %s233_s26 = scalar_lea.vmem %s3704_s2, %s3711_s12 }
  0x10   : > { %s3014_s17 = smul.u32 44, %s3711_s12 }
  0x11   : > { %s3201_s20 = scalar_lea.vmem %s3702_s0, %s3013_s16  ;;  %s3015_s27 = smul.u32 24, %s3711_s12 }
  0x12   : > { %s230_s23 = scalar_lea.vmem %s3703_s1, %s3014_s17  ;;  %v3047_v0 = vld [vmem:[%s3201_s20] sm:$0xff]   ;;  %v3048_v4 = vld [vmem:[%s3201_s20 + $0x150] sm:$0xff]   ;;  %v3049_v11 = vld [vmem:[%s3201_s20 + $0x8] sm:$0xff]  }
  0x13   : > { %v3041_v1 = vld [vmem:[%s230_s23] sm:$0xff]   ;;  %v3042_v2 = vld [vmem:[%s230_s23 + $0x8] sm:$0xff]   ;;  %2833 = vmatprep.mubr.msk.bf16.mxu0 %vm884_vm0, %v3047_v0  ;;  %v3043_v3 = vld [vmem:[%s230_s23 + $0x10] sm:$0xff]   ;;  %2917 = vmatprep.mubr.msk.bf16.mxu1 %vm884_vm0, %v3048_v4  ;;  %s3602_s30 = scalar_lea.vmem %s3705_s3, %s3015_s27 }
  0x14   : > { %2821 = vmatprep.subr.bf16.mxu0 %v3041_v1  ;;  %3001 = vmatprep.subr.bf16.mxu1 %v3041_v1  ;;  %v3044_v5 = vld [vmem:[%s230_s23 + $0x18] sm:$0xff]   ;;  %v3046_v6 = vld [vmem:[%s230_s23 + $0x28] ss:$0 sps:$4 sm:$0x11]   ;;  %v3045_v7 = vld [vmem:[%s230_s23 + $0x20] sm:$0xff]  }
  0x15   : > { %2822 = vmatpush3.bf16.msra.mxu0 %v3041_v1  ;;  %3007 = vmatpush3.bf16.msra.mxu1 %v3041_v1  ;;  %v1141_v10 = vand.u32 %v3046_v6, %v1139_v9  ;;  %v3050_v12 = vld [vmem:[%s3201_s20 + $0x158] sm:$0xff]   ;;  %v3051_v13 = vld [vmem:[%s3201_s20 + $0x10] sm:$0xff]   ;;  %v3052_v14 = vld [vmem:[%s3201_s20 + $0x160] sm:$0xff]  }
  0x16   : > { %2823 = vmatprep.subr.bf16.mxu0 %v3042_v2  ;;  %3002 = vmatprep.subr.bf16.mxu1 %v3042_v2  ;;  %v3053_v15 = vld [vmem:[%s3201_s20 + $0x18] sm:$0xff]   ;;  %v3054_v16 = vld [vmem:[%s3201_s20 + $0x168] sm:$0xff]   ;;  %v3055_v17 = vld [vmem:[%s3201_s20 + $0x20] sm:$0xff]  }
  0x17   : > { %v3056_v18 = vld [vmem:[%s3201_s20 + $0x170] sm:$0xff]   ;;  %v3057_v19 = vld [vmem:[%s3201_s20 + $0x28] sm:$0xff]   ;;  %v3058_v20 = vld [vmem:[%s3201_s20 + $0x178] sm:$0xff]  }
  0x18   : > { %v3059_v21 = vld [vmem:[%s3201_s20 + $0x30] sm:$0xff]   ;;  %v3060_v22 = vld [vmem:[%s3201_s20 + $0x180] sm:$0xff]   ;;  %v3061_v23 = vld [vmem:[%s3201_s20 + $0x38] sm:$0xff]  }
  0x19   : > { %2824 = vmatpush3.bf16.msra.mxu0 %v3042_v2  ;;  %3008 = vmatpush3.bf16.msra.mxu1 %v3042_v2  ;;  %v3062_v24 = vld [vmem:[%s3201_s20 + $0x188] sm:$0xff]   ;;  %v3063_v25 = vld [vmem:[%s3201_s20 + $0x40] sm:$0xff]   ;;  %v3064_v26 = vld [vmem:[%s3201_s20 + $0x190] sm:$0xff]  }
  0x1a   : > { %2825 = vmatprep.subr.bf16.mxu0 %v3043_v3  ;;  %3003 = vmatprep.subr.bf16.mxu1 %v3043_v3  ;;  %v3065_v27 = vld [vmem:[%s3201_s20 + $0x48] sm:$0xff]   ;;  %v3066_v28 = vld [vmem:[%s3201_s20 + $0x198] sm:$0xff]   ;;  %v3067_v29 = vld [vmem:[%s3201_s20 + $0x50] sm:$0xff]  }
  0x1b   : > { %v3068_v30 = vld [vmem:[%s3201_s20 + $0x1a0] sm:$0xff]   ;;  %v3069_v31 = vld [vmem:[%s3201_s20 + $0x58] sm:$0xff]   ;;  %v3070_v32 = vld [vmem:[%s3201_s20 + $0x1a8] sm:$0xff]  }
  0x1c   : > { %v3071_v33 = vld [vmem:[%s3201_s20 + $0x60] sm:$0xff]   ;;  %v3072_v34 = vld [vmem:[%s3201_s20 + $0x1b0] sm:$0xff]   ;;  %v3073_v35 = vld [vmem:[%s3201_s20 + $0x68] sm:$0xff]  }
  0x1d   : > { %2826 = vmatpush3.bf16.msra.mxu0 %v3043_v3  ;;  %3009 = vmatpush3.bf16.msra.mxu1 %v3043_v3  ;;  %v3074_v36 = vld [vmem:[%s3201_s20 + $0x1b8] sm:$0xff]   ;;  %v3075_v37 = vld [vmem:[%s3201_s20 + $0x70] sm:$0xff]   ;;  %v3076_v38 = vld [vmem:[%s3201_s20 + $0x1c0] sm:$0xff]  }
  0x1e   : > { %2827 = vmatprep.subr.bf16.mxu0 %v3044_v5  ;;  %3004 = vmatprep.subr.bf16.mxu1 %v3044_v5  ;;  %v3077_v39 = vld [vmem:[%s3201_s20 + $0x78] sm:$0xff]   ;;  %v3078_v40 = vld [vmem:[%s3201_s20 + $0x1c8] sm:$0xff]   ;;  %v3079_v41 = vld [vmem:[%s3201_s20 + $0x80] sm:$0xff]  }
  0x1f   : > { %v3080_v42 = vld [vmem:[%s3201_s20 + $0x1d0] sm:$0xff]   ;;  %v3081_v43 = vld [vmem:[%s3201_s20 + $0x88] sm:$0xff]   ;;  %v3082_v44 = vld [vmem:[%s3201_s20 + $0x1d8] sm:$0xff]  }
  0x20   : > { %v3083_v45 = vld [vmem:[%s3201_s20 + $0x90] sm:$0xff]   ;;  %v3084_v46 = vld [vmem:[%s3201_s20 + $0x1e0] sm:$0xff]   ;;  %v3085_v47 = vld [vmem:[%s3201_s20 + $0x98] sm:$0xff]  }
  0x21   : > { %2828 = vmatpush3.bf16.msra.mxu0 %v3044_v5  ;;  %3010 = vmatpush3.bf16.msra.mxu1 %v3044_v5  ;;  %v3086_v48 = vld [vmem:[%s3201_s20 + $0x1e8] sm:$0xff]   ;;  %v3087_v49 = vld [vmem:[%s3201_s20 + $0xa0] sm:$0xff]   ;;  %v3088_v50 = vld [vmem:[%s3201_s20 + $0x1f0] sm:$0xff]  }
  0x22   : > { %2829 = vmatprep.subr.bf16.mxu0 %v3045_v7  ;;  %3005 = vmatprep.subr.bf16.mxu1 %v3045_v7  ;;  %v3089_v51 = vld [vmem:[%s3201_s20 + $0xa8] sm:$0xff]   ;;  %v3090_v52 = vld [vmem:[%s3201_s20 + $0x1f8] sm:$0xff]   ;;  %v3091_v53 = vld [vmem:[%s3201_s20 + $0xb0] sm:$0xff]  }
  0x23   : > { %v3092_v54 = vld [vmem:[%s3201_s20 + $0x200] sm:$0xff]   ;;  %v3093_v55 = vld [vmem:[%s3201_s20 + $0xb8] sm:$0xff]   ;;  %v3094_v56 = vld [vmem:[%s3201_s20 + $0x208] sm:$0xff]  }
  0x24   : > { %v3095_v57 = vld [vmem:[%s3201_s20 + $0xc0] sm:$0xff]   ;;  %v3096_v58 = vld [vmem:[%s3201_s20 + $0x210] sm:$0xff]   ;;  %v3097_v59 = vld [vmem:[%s3201_s20 + $0xc8] sm:$0xff]  }
  0x25   : > { %2830 = vmatpush3.bf16.msra.mxu0 %v3045_v7  ;;  %3011 = vmatpush3.bf16.msra.mxu1 %v3045_v7  ;;  %v3098_v60 = vld [vmem:[%s3201_s20 + $0x218] sm:$0xff]   ;;  %v3099_v61 = vld [vmem:[%s3201_s20 + $0xd0] sm:$0xff]   ;;  %v3100_v62 = vld [vmem:[%s3201_s20 + $0x220] sm:$0xff]  }
  0x26   : > { %2831 = vmatprep.subr.bf16.mxu0 %v1141_v10  ;;  %3006 = vmatprep.subr.bf16.mxu1 %v1141_v10  ;;  %v3101_v63 = vld [vmem:[%s3201_s20 + $0xd8] sm:$0xff]   ;;  %v3102_v0 = vld [vmem:[%s3201_s20 + $0x228] sm:$0xff]   ;;  %v3103_v1 = vld [vmem:[%s3201_s20 + $0xe0] sm:$0xff]  }
  0x27   : > { %v3104_v2 = vld [vmem:[%s3201_s20 + $0x230] sm:$0xff]   ;;  %v3105_v3 = vld [vmem:[%s3201_s20 + $0xe8] sm:$0xff]   ;;  %v3106_v4 = vld [vmem:[%s3201_s20 + $0x238] sm:$0xff]  }
  0x28   : > { %v3107_v5 = vld [vmem:[%s3201_s20 + $0xf0] sm:$0xff]   ;;  %v3108_v6 = vld [vmem:[%s3201_s20 + $0x240] sm:$0xff]   ;;  %v3109_v7 = vld [vmem:[%s3201_s20 + $0xf8] sm:$0xff]  }
  0x29   : > { %2832 = vmatpush3.bf16.msra.mxu0 %v1141_v10  ;;  %3012 = vmatpush3.bf16.msra.mxu1 %v1141_v10  ;;  %v3110_v8 = vld [vmem:[%s3201_s20 + $0x248] sm:$0xff]   ;;  %v3111_v9 = vld [vmem:[%s3201_s20 + $0x100] sm:$0xff]   ;;  %v3112_v10 = vld [vmem:[%s3201_s20 + $0x250] sm:$0xff]  }
  0x2c   : > { %2834 = vmatmul.mubr.msk.bf16.vlgmr.msra.gmra.mrb[0].mxu0 %vm884_vm0, %v3049_v11  ;;  %2918 = vmatmul.mubr.msk.bf16.vlgmr.msra.gmra.mrb[0].mxu1 %vm884_vm0, %v3050_v12  ;;  %v3113_v11 = vld [vmem:[%s3201_s20 + $0x108] sm:$0xff]   ;;  %v3114_v12 = vld [vmem:[%s3201_s20 + $0x258] sm:$0xff]  }
  0x2d   : > { %2837 = vmatprep.mubr.msk.bf16.mxu0 %vm884_vm0, %v3051_v13  ;;  %2921 = vmatprep.mubr.msk.bf16.mxu1 %vm884_vm0, %v3052_v14  ;;  %v3115_v13 = vld [vmem:[%s3201_s20 + $0x110] sm:$0xff]   ;;  %v3116_v14 = vld [vmem:[%s3201_s20 + $0x260] sm:$0xff]  }
  0x34   : > { %2838 = vmatmul.mubr.msk.bf16.gmra.mrb[4].mxu0 %vm884_vm0, %v3053_v15  ;;  %2922 = vmatmul.mubr.msk.bf16.gmra.mrb[4].mxu1 %vm884_vm0, %v3054_v16  ;;  %v3117_v15 = vld [vmem:[%s3201_s20 + $0x118] sm:$0xff]   ;;  %v3118_v16 = vld [vmem:[%s3201_s20 + $0x268] sm:$0xff]  }
  0x35   : > { %2841 = vmatprep.mubr.msk.bf16.mxu0 %vm884_vm0, %v3055_v17  ;;  %2925 = vmatprep.mubr.msk.bf16.mxu1 %vm884_vm0, %v3056_v18  ;;  %v3119_v17 = vld [vmem:[%s3201_s20 + $0x120] sm:$0xff]   ;;  %v3120_v18 = vld [vmem:[%s3201_s20 + $0x270] sm:$0xff]  }
  0x3c   : > { %2842 = vmatmul.mubr.msk.bf16.gmra.mrb[8].mxu0 %vm884_vm0, %v3057_v19  ;;  %2926 = vmatmul.mubr.msk.bf16.gmra.mrb[8].mxu1 %vm884_vm0, %v3058_v20  ;;  %v3121_v19 = vld [vmem:[%s3201_s20 + $0x128] sm:$0xff]   ;;  %v3122_v20 = vld [vmem:[%s3201_s20 + $0x278] sm:$0xff]  }
  0x3d   : > { %2845 = vmatprep.mubr.msk.bf16.mxu0 %vm884_vm0, %v3059_v21  ;;  %2929 = vmatprep.mubr.msk.bf16.mxu1 %vm884_vm0, %v3060_v22  ;;  %v3123_v21 = vld [vmem:[%s3201_s20 + $0x130] sm:$0xff]   ;;  %v3124_v22 = vld [vmem:[%s3201_s20 + $0x280] sm:$0xff]  }
  0x44   : > { %2846 = vmatmul.mubr.msk.bf16.gmra.mrb[12].mxu0 %vm884_vm0, %v3061_v23  ;;  %2930 = vmatmul.mubr.msk.bf16.gmra.mrb[12].mxu1 %vm884_vm0, %v3062_v24  ;;  %v3125_v23 = vld [vmem:[%s3201_s20 + $0x138] sm:$0xff]   ;;  %v3126_v24 = vld [vmem:[%s3201_s20 + $0x288] sm:$0xff]  }
  0x45   : > { %2849 = vmatprep.mubr.msk.bf16.mxu0 %vm884_vm0, %v3063_v25  ;;  %2933 = vmatprep.mubr.msk.bf16.mxu1 %vm884_vm0, %v3064_v26  ;;  %v3127_v25 = vld [vmem:[%s3201_s20 + $0x140] sm:$0xff]   ;;  %v3128_v26 = vld [vmem:[%s3201_s20 + $0x290] sm:$0xff]  }
  0x4c   : > { %2850 = vmatmul.mubr.msk.bf16.gmra.mrb[16].mxu0 %vm884_vm0, %v3065_v27  ;;  %2934 = vmatmul.mubr.msk.bf16.gmra.mrb[16].mxu1 %vm884_vm0, %v3066_v28  ;;  %v3129_v27 = vld [vmem:[%s3201_s20 + $0x148] sm:$0xff]   ;;  %v3130_v28 = vld [vmem:[%s3201_s20 + $0x298] sm:$0xff]  }
  0x4d   : > { %2853 = vmatprep.mubr.msk.bf16.mxu0 %vm884_vm0, %v3067_v29  ;;  %2937 = vmatprep.mubr.msk.bf16.mxu1 %vm884_vm0, %v3068_v30  ;;  %v426_v29 = vlaneseq }
  0x4f   : > { %v3374_v30 = vshrl.u32 %v426_v29, 7 }
  0x54   : > { %2854 = vmatmul.mubr.msk.bf16.gmra.mrb[20].mxu0 %vm884_vm0, %v3069_v31  ;;  %2938 = vmatmul.mubr.msk.bf16.gmra.mrb[20].mxu1 %vm884_vm0, %v3070_v32  ;;  %v428_v31 = vsub.s32 0, %v3374_v30  ;;  %v3381_v32 = vld [vmem:[%s233_s26] sm:$0x1] }
  0x55   : > { %2857 = vmatprep.mubr.msk.bf16.mxu0 %vm884_vm0, %v3071_v33  ;;  %2941 = vmatprep.mubr.msk.bf16.mxu1 %vm884_vm0, %v3072_v34 }
  0x56   : > { %v3386_v33 = vrot.slane %v3381_v32, %v428_v31 }
  0x5c   : > { %2858 = vmatmul.mubr.msk.bf16.gmra.mrb[24].mxu0 %vm884_vm0, %v3073_v35  ;;  %2942 = vmatmul.mubr.msk.bf16.gmra.mrb[24].mxu1 %vm884_vm0, %v3074_v36 }
  0x5d   : > { %2861 = vmatprep.mubr.msk.bf16.mxu0 %vm884_vm0, %v3075_v37  ;;  %2945 = vmatprep.mubr.msk.bf16.mxu1 %vm884_vm0, %v3076_v38 }
  0x64   : > { %2862 = vmatmul.mubr.msk.bf16.gmra.mrb[28].mxu0 %vm884_vm0, %v3077_v39  ;;  %2946 = vmatmul.mubr.msk.bf16.gmra.mrb[28].mxu1 %vm884_vm0, %v3078_v40 }
  0x65   : > { %2865 = vmatprep.mubr.msk.bf16.mxu0 %vm884_vm0, %v3079_v41  ;;  %2949 = vmatprep.mubr.msk.bf16.mxu1 %vm884_vm0, %v3080_v42 }
  0x6c   : > { %2866 = vmatmul.mubr.msk.bf16.gmra.mrb[32].mxu0 %vm884_vm0, %v3081_v43  ;;  %2950 = vmatmul.mubr.msk.bf16.gmra.mrb[32].mxu1 %vm884_vm0, %v3082_v44 }
  0x6d   : > { %2869 = vmatprep.mubr.msk.bf16.mxu0 %vm884_vm0, %v3083_v45  ;;  %2953 = vmatprep.mubr.msk.bf16.mxu1 %vm884_vm0, %v3084_v46 }
  0x74   : > { %2870 = vmatmul.mubr.msk.bf16.gmra.mrb[36].mxu0 %vm884_vm0, %v3085_v47  ;;  %2954 = vmatmul.mubr.msk.bf16.gmra.mrb[36].mxu1 %vm884_vm0, %v3086_v48 }
  0x75   : > { %2873 = vmatprep.mubr.msk.bf16.mxu0 %vm884_vm0, %v3087_v49  ;;  %2957 = vmatprep.mubr.msk.bf16.mxu1 %vm884_vm0, %v3088_v50 }
  0x7c   : > { %2874 = vmatmul.mubr.msk.bf16.gmra.mrb[40].mxu0 %vm884_vm0, %v3089_v51  ;;  %2958 = vmatmul.mubr.msk.bf16.gmra.mrb[40].mxu1 %vm884_vm0, %v3090_v52 }
  0x7d   : > { %2877 = vmatprep.mubr.msk.bf16.mxu0 %vm884_vm0, %v3091_v53  ;;  %2961 = vmatprep.mubr.msk.bf16.mxu1 %vm884_vm0, %v3092_v54 }
  0x84   : > { %2878 = vmatmul.mubr.msk.bf16.gmra.mrb[44].mxu0 %vm884_vm0, %v3093_v55  ;;  %2962 = vmatmul.mubr.msk.bf16.gmra.mrb[44].mxu1 %vm884_vm0, %v3094_v56 }
  0x85   : > { %2881 = vmatprep.mubr.msk.bf16.mxu0 %vm884_vm0, %v3095_v57  ;;  %2965 = vmatprep.mubr.msk.bf16.mxu1 %vm884_vm0, %v3096_v58 }
  0x8c   : > { %2882 = vmatmul.mubr.msk.bf16.gmra.mrb[48].mxu0 %vm884_vm0, %v3097_v59  ;;  %2966 = vmatmul.mubr.msk.bf16.gmra.mrb[48].mxu1 %vm884_vm0, %v3098_v60 }
  0x8d   : > { %2885 = vmatprep.mubr.msk.bf16.mxu0 %vm884_vm0, %v3099_v61  ;;  %2969 = vmatprep.mubr.msk.bf16.mxu1 %vm884_vm0, %v3100_v62 }
  0x94   : > { %2886 = vmatmul.mubr.msk.bf16.gmra.mrb[52].mxu0 %vm884_vm0, %v3101_v63  ;;  %2970 = vmatmul.mubr.msk.bf16.gmra.mrb[52].mxu1 %vm884_vm0, %v3102_v0 }
  0x95   : > { %2889 = vmatprep.mubr.msk.bf16.mxu0 %vm884_vm0, %v3103_v1  ;;  %2973 = vmatprep.mubr.msk.bf16.mxu1 %vm884_vm0, %v3104_v2 }
  0x9c   : > { %2890 = vmatmul.mubr.msk.bf16.gmra.mrb[56].mxu0 %vm884_vm0, %v3105_v3  ;;  %2974 = vmatmul.mubr.msk.bf16.gmra.mrb[56].mxu1 %vm884_vm0, %v3106_v4 }
  0x9d   : > { %2893 = vmatprep.mubr.msk.bf16.mxu0 %vm884_vm0, %v3107_v5  ;;  %2977 = vmatprep.mubr.msk.bf16.mxu1 %vm884_vm0, %v3108_v6 }
  0xa4   : > { %2894 = vmatmul.mubr.msk.bf16.gmra.mrb[60].mxu0 %vm884_vm0, %v3109_v7  ;;  %2978 = vmatmul.mubr.msk.bf16.gmra.mrb[60].mxu1 %vm884_vm0, %v3110_v8 }
  0xa5   : > { %2897 = vmatprep.mubr.msk.bf16.mxu0 %vm884_vm0, %v3111_v9  ;;  %2981 = vmatprep.mubr.msk.bf16.mxu1 %vm884_vm0, %v3112_v10 }
  0xac   : > { %2898 = vmatmul.mubr.msk.bf16.gmra.mrb[64].mxu0 %vm884_vm0, %v3113_v11  ;;  %2982 = vmatmul.mubr.msk.bf16.gmra.mrb[64].mxu1 %vm884_vm0, %v3114_v12 }
  0xad   : > { %2901 = vmatprep.mubr.msk.bf16.mxu0 %vm884_vm0, %v3115_v13  ;;  %2985 = vmatprep.mubr.msk.bf16.mxu1 %vm884_vm0, %v3116_v14 }
  0xb4   : > { %2902 = vmatmul.mubr.msk.bf16.gmra.mrb[68].mxu0 %vm884_vm0, %v3117_v15  ;;  %2986 = vmatmul.mubr.msk.bf16.gmra.mrb[68].mxu1 %vm884_vm0, %v3118_v16 }
  0xb5   : > { %2905 = vmatprep.mubr.msk.bf16.mxu0 %vm884_vm0, %v3119_v17  ;;  %2989 = vmatprep.mubr.msk.bf16.mxu1 %vm884_vm0, %v3120_v18 }
  0xbc   : > { %2906 = vmatmul.mubr.msk.bf16.gmra.mrb[72].mxu0 %vm884_vm0, %v3121_v19  ;;  %2990 = vmatmul.mubr.msk.bf16.gmra.mrb[72].mxu1 %vm884_vm0, %v3122_v20 }
  0xbd   : > { %2909 = vmatprep.mubr.msk.bf16.mxu0 %vm884_vm0, %v3123_v21  ;;  %2993 = vmatprep.mubr.msk.bf16.mxu1 %vm884_vm0, %v3124_v22 }
  0xc4   : > { %2910 = vmatmul.mubr.msk.bf16.gmra.mrb[76].mxu0 %vm884_vm0, %v3125_v23  ;;  %2994 = vmatmul.mubr.msk.bf16.gmra.mrb[76].mxu1 %vm884_vm0, %v3126_v24 }
  0xc5   : > { %2913 = vmatprep.mubr.msk.bf16.mxu0 %vm884_vm0, %v3127_v25  ;;  %2997 = vmatprep.mubr.msk.bf16.mxu1 %vm884_vm0, %v3128_v26 }
  0xcc   : > { %2914 = vmatmul.mubr.msk.bf16.gmra.mrb[80].mxu0 %vm884_vm0, %v3129_v27  ;;  %2998 = vmatmul.mubr.msk.bf16.gmra.mrb[80].mxu1 %vm884_vm0, %v3130_v28 }
  0xff   : > { %v2835_v34 = vpop.f32.mrb[0].mxu0  ;;  %v2919_v35 = vpop.f32.mrb[0].mxu1 }
 0x100   : > { %v1177_v36 = vpop.f32.mrb[1].mxu0  ;;  %v1513_v37 = vpop.f32.mrb[1].mxu1  ;;  %v1522_v38 = vadd.f32 %v2919_v35, %v3386_v33  ;;  %v1186_v45 = vadd.f32 %v2835_v34, %v3386_v33 }
 0x101   : > { %v1178_v39 = vadd.f32 %v1177_v36, %v3386_v33  ;;  %v1514_v40 = vadd.f32 %v1513_v37, %v3386_v33  ;;  %v2836_v41 = vpop.f32.mrb[2].mxu0  ;;  %v2920_v42 = vpop.f32.mrb[2].mxu1 }
 0x102   : > { %v1180_v43 = vpop.f32.mrb[3].mxu0  ;;  %v1516_v44 = vpop.f32.mrb[3].mxu1  ;;  %v1189_v49 = vadd.f32 %v2836_v41, %v3386_v33  ;;  %v1525_v50 = vadd.f32 %v2920_v42, %v3386_v33  ;;  %v1934_v51 = vmax.f32 %v1522_v38, 0.0  ;;  %v1850_v55 = vmax.f32 %v1186_v45, 0.0 }
 0x103   : > { %v1932_v46 = vmax.f32 %v1514_v40, 0.0  ;;  %v1181_v47 = vadd.f32 %v1180_v43, %v3386_v33  ;;  %v1517_v48 = vadd.f32 %v1516_v44, %v3386_v33  ;;  %v1848_v52 = vmax.f32 %v1178_v39, 0.0 }
 0x104   : > { %v1851_v60 = vmax.f32 %v1189_v49, 0.0  ;;  %v1935_v61 = vmax.f32 %v1525_v50, 0.0 }
 0x105   : > { %v1849_v53 = vmax.f32 %v1181_v47, 0.0  ;;  %v1933_v54 = vmax.f32 %v1517_v48, 0.0 }
 0x107   : > { %v2016_v56 = vadd.f32 %v1849_v53, %v1848_v52  ;;  %v2160_v57 = vadd.f32 %v1933_v54, %v1932_v46  ;;  %v2839_v58 = vpop.f32.mrb[4].mxu0  ;;  %v2923_v59 = vpop.f32.mrb[4].mxu1 }
 0x108   : > { %v1193_v62 = vpop.f32.mrb[5].mxu0  ;;  %v1529_v63 = vpop.f32.mrb[5].mxu1  ;;  %v1538_v6 = vadd.f32 %v2923_v59, %v3386_v33  ;;  %v1202_v13 = vadd.f32 %v2839_v58, %v3386_v33 }
 0x109   : > { %v2017_v0 = vadd.f32 %v2016_v56, %v1850_v55  ;;  %v2161_v1 = vadd.f32 %v2160_v57, %v1934_v51  ;;  %v1194_v2 = vadd.f32 %v1193_v62, %v3386_v33  ;;  %v1530_v3 = vadd.f32 %v1529_v63, %v3386_v33  ;;  %v2840_v4 = vpop.f32.mrb[6].mxu0  ;;  %v2924_v5 = vpop.f32.mrb[6].mxu1 }
 0x10a   : > { %v1196_v7 = vpop.f32.mrb[7].mxu0  ;;  %v1532_v8 = vpop.f32.mrb[7].mxu1  ;;  %v1938_v18 = vmax.f32 %v1538_v6, 0.0  ;;  %v1205_v21 = vadd.f32 %v2840_v4, %v3386_v33  ;;  %v1541_v22 = vadd.f32 %v2924_v5, %v3386_v33  ;;  %v1854_v25 = vmax.f32 %v1202_v13, 0.0 }
 0x10b   : > { %v1852_v9 = vmax.f32 %v1194_v2, 0.0  ;;  %v2018_v10 = vadd.f32 %v2017_v0, %v1851_v60  ;;  %v1936_v11 = vmax.f32 %v1530_v3, 0.0  ;;  %v2162_v12 = vadd.f32 %v2161_v1, %v1935_v61 }
 0x10c   : > { %v1197_v14 = vadd.f32 %v1196_v7, %v3386_v33  ;;  %v1533_v15 = vadd.f32 %v1532_v8, %v3386_v33  ;;  %v1855_v43 = vmax.f32 %v1205_v21, 0.0  ;;  %v1939_v44 = vmax.f32 %v1541_v22, 0.0 }
 0x10d   : > { %v2019_v16 = vadd.f32 %v2018_v10, %v1852_v9  ;;  %v2163_v17 = vadd.f32 %v2162_v12, %v1936_v11 }
 0x10e   : > { %v1853_v19 = vmax.f32 %v1197_v14, 0.0  ;;  %v1937_v20 = vmax.f32 %v1533_v15, 0.0 }
 0x10f   : > { %v2843_v23 = vpop.f32.mrb[8].mxu0  ;;  %v2927_v24 = vpop.f32.mrb[8].mxu1 }
 0x110   : > { %v2020_v26 = vadd.f32 %v2019_v16, %v1853_v19  ;;  %v2164_v27 = vadd.f32 %v2163_v17, %v1937_v20  ;;  %v1209_v28 = vpop.f32.mrb[9].mxu0  ;;  %v1545_v29 = vpop.f32.mrb[9].mxu1  ;;  %v1554_v40 = vadd.f32 %v2927_v24, %v3386_v33  ;;  %v1218_v48 = vadd.f32 %v2843_v23, %v3386_v33 }
 0x111   : > { %v1210_v34 = vadd.f32 %v1209_v28, %v3386_v33  ;;  %v1546_v35 = vadd.f32 %v1545_v29, %v3386_v33  ;;  %v2844_v36 = vpop.f32.mrb[10].mxu0  ;;  %v2928_v37 = vpop.f32.mrb[10].mxu1  ;;  %v2304_v24 = vmax.f32 %v3381_v32, 0.0 }
 0x112   : > { %v2021_v38 = vadd.f32 %v2020_v26, %v1854_v25  ;;  %v3406_v39 = vadd.f32 %v2164_v27, %v1938_v18  ;;  %v1212_v41 = vpop.f32.mrb[11].mxu0  ;;  %v1548_v42 = vpop.f32.mrb[11].mxu1  ;;  %v1221_v53 = vadd.f32 %v2844_v36, %v3386_v33  ;;  %v1942_v54 = vmax.f32 %v1554_v40, 0.0 }
 0x113   : > { %v1856_v45 = vmax.f32 %v1210_v34, 0.0  ;;  %v1940_v46 = vmax.f32 %v1546_v35, 0.0  ;;  %v1213_v49 = vadd.f32 %v1212_v41, %v3386_v33  ;;  %v1549_v50 = vadd.f32 %v1548_v42, %v3386_v33 }
 0x114   : > { %v2022_v47 = vrot.slane %v2021_v38, 4  ;;  %v1557_v55 = vadd.f32 %v2928_v37, %v3386_v33  ;;  %v1858_v61 = vmax.f32 %v1218_v48, 0.0  ;;  %v1859_v2 = vmax.f32 %v1221_v53, 0.0 }
 0x115   : > { %v2028_v51 = vadd.f32 %v1856_v45, %v1855_v43  ;;  %v2172_v52 = vadd.f32 %v1940_v46, %v1939_v44  ;;  %v1857_v56 = vmax.f32 %v1213_v49, 0.0  ;;  %v1941_v57 = vmax.f32 %v1549_v50, 0.0 }
 0x116   : > { %v2023_v60 = vadd.f32 %v2022_v47, %v2021_v38  ;;  %v1943_v8 = vmax.f32 %v1557_v55, 0.0  ;;  %v2305_v32 = vmul.f32 7.0, %v2304_v24 }
 0x117   : > { %v2847_v58 = vpop.f32.mrb[12].mxu0  ;;  %v2931_v59 = vpop.f32.mrb[12].mxu1  ;;  %v2029_v62 = vadd.f32 %v2028_v51, %v1857_v56  ;;  %v2173_v63 = vadd.f32 %v2172_v52, %v1941_v57 }
 0x118   : > { %v1225_v0 = vpop.f32.mrb[13].mxu0  ;;  %v1561_v1 = vpop.f32.mrb[13].mxu1  ;;  %v1570_v3 = vadd.f32 %v2931_v59, %v3386_v33  ;;  %v1234_v11 = vadd.f32 %v2847_v58, %v3386_v33  ;;  %v2024_v16 = vrot.slane %v2023_v60, 2 }
 0x119   : > { %v1226_v4 = vadd.f32 %v1225_v0, %v3386_v33  ;;  %v1562_v5 = vadd.f32 %v1561_v1, %v3386_v33  ;;  %v2848_v6 = vpop.f32.mrb[14].mxu0  ;;  %v2932_v7 = vpop.f32.mrb[14].mxu1  ;;  %v2030_v9 = vadd.f32 %v2029_v62, %v1858_v61  ;;  %v2174_v10 = vadd.f32 %v2173_v63, %v1942_v54 }
 0x11a   : > { %v1228_v12 = vpop.f32.mrb[15].mxu0  ;;  %v1564_v13 = vpop.f32.mrb[15].mxu1  ;;  %v1946_v17 = vmax.f32 %v1570_v3, 0.0  ;;  %v1237_v20 = vadd.f32 %v2848_v6, %v3386_v33  ;;  %v1573_v21 = vadd.f32 %v2932_v7, %v3386_v33  ;;  %v1862_v25 = vmax.f32 %v1234_v11, 0.0 }
 0x11b   : > { %v1860_v14 = vmax.f32 %v1226_v4, 0.0  ;;  %v1944_v15 = vmax.f32 %v1562_v5, 0.0  ;;  %v2031_v18 = vadd.f32 %v2030_v9, %v1859_v2  ;;  %v2175_v19 = vadd.f32 %v2174_v10, %v1943_v8 }
 0x11c   : > { %v1229_v22 = vadd.f32 %v1228_v12, %v3386_v33  ;;  %v1565_v23 = vadd.f32 %v1564_v13, %v3386_v33  ;;  %v1863_v28 = vmax.f32 %v1237_v20, 0.0  ;;  %v1947_v29 = vmax.f32 %v1573_v21, 0.0 }
 0x11d   : > { %v2032_v26 = vadd.f32 %v2031_v18, %v1860_v14  ;;  %v2176_v27 = vadd.f32 %v2175_v19, %v1944_v15  ;;  %v2025_v38 = vadd.f32 %v2024_v16, %v2023_v60  ;;  %v3434_v63 = vrot.slane %v2305_v32, %v428_v31 }
 0x11e   : > { %v1861_v34 = vmax.f32 %v1229_v22, 0.0  ;;  %v1945_v35 = vmax.f32 %v1565_v23, 0.0  ;;  %v2040_v42 = vadd.f32 %v1863_v28, %v1862_v25  ;;  %v2184_v43 = vadd.f32 %v1947_v29, %v1946_v17 }
 0x11f   : > { %v2851_v36 = vpop.f32.mrb[16].mxu0  ;;  %v2935_v37 = vpop.f32.mrb[16].mxu1  ;;  %v2026_v53 = vrot.slane %v2025_v38, 1 }
 0x120   : > { %v1241_v40 = vpop.f32.mrb[17].mxu0  ;;  %v1577_v41 = vpop.f32.mrb[17].mxu1  ;;  %v2033_v44 = vadd.f32 %v2032_v26, %v1861_v34  ;;  %v3423_v45 = vadd.f32 %v2176_v27, %v1945_v35  ;;  %v1586_v54 = vadd.f32 %v2935_v37, %v3386_v33  ;;  %v1250_v57 = vadd.f32 %v2851_v36, %v3386_v33 }
 0x121   : > { %v2852_v46 = vpop.f32.mrb[18].mxu0  ;;  %v2936_v47 = vpop.f32.mrb[18].mxu1  ;;  %v1242_v49 = vadd.f32 %v1241_v40, %v3386_v33  ;;  %v1578_v50 = vadd.f32 %v1577_v41, %v3386_v33  ;;  %v2027_v5 = vadd.f32 %v2026_v53, %v2025_v38 }
 0x122   : > { %v2034_v48 = vrot.slane %v2033_v44, 4  ;;  %v1244_v51 = vpop.f32.mrb[19].mxu0  ;;  %v1580_v52 = vpop.f32.mrb[19].mxu1  ;;  %v1253_v60 = vadd.f32 %v2852_v46, %v3386_v33  ;;  %v1950_v6 = vmax.f32 %v1586_v54, 0.0  ;;  %v1589_v7 = vadd.f32 %v2936_v47, %v3386_v33 }
 0x123   : > { %v1245_v55 = vadd.f32 %v1244_v51, %v3386_v33  ;;  %v1864_v58 = vmax.f32 %v1242_v49, 0.0  ;;  %v1948_v59 = vmax.f32 %v1578_v50, 0.0  ;;  %v1581_v62 = vadd.f32 %v1580_v52, %v3386_v33 }
 0x124   : > { %v2035_v56 = vadd.f32 %v2034_v48, %v2033_v44  ;;  %v1866_v12 = vmax.f32 %v1250_v57, 0.0  ;;  %v1867_v15 = vmax.f32 %v1253_v60, 0.0  ;;  %v1951_v25 = vmax.f32 %v1589_v7, 0.0 }
 0x125   : > { %v1865_v61 = vmax.f32 %v1245_v55, 0.0  ;;  %v2041_v1 = vadd.f32 %v2040_v42, %v1864_v58  ;;  %v2185_v2 = vadd.f32 %v2184_v43, %v1948_v59  ;;  %v1949_v8 = vmax.f32 %v1581_v62, 0.0 }
 0x126   : > { %v2036_v0 = vrot.slane %v2035_v56, 2  ;;  %v2312_v29 = vsub.f32 %v2027_v5, %v3434_v63 }
 0x127   : > { %v2855_v3 = vpop.f32.mrb[20].mxu0  ;;  %v2939_v4 = vpop.f32.mrb[20].mxu1  ;;  %v2042_v13 = vadd.f32 %v2041_v1, %v1865_v61  ;;  %v2186_v16 = vadd.f32 %v2185_v2, %v1949_v8 }
 0x128   : > { %v1257_v9 = vpop.f32.mrb[21].mxu0  ;;  %v1593_v10 = vpop.f32.mrb[21].mxu1  ;;  %v2037_v11 = vadd.f32 %v2036_v0, %v2035_v56  ;;  %v1602_v17 = vadd.f32 %v2939_v4, %v3386_v33  ;;  %v1266_v23 = vadd.f32 %v2855_v3, %v3386_v33  ;;  %v2336_v61 = vmul.f32 0.020408163, %v2312_v29 }
 0x129   : > { %v1258_v14 = vadd.f32 %v1257_v9, %v3386_v33  ;;  %v2856_v30 = vpop.f32.mrb[22].mxu0  ;;  %v2940_v31 = vpop.f32.mrb[22].mxu1  ;;  %v1594_v18 = vadd.f32 %v1593_v10, %v3386_v33  ;;  %v2043_v22 = vadd.f32 %v2042_v13, %v1866_v12  ;;  %v2187_v26 = vadd.f32 %v2186_v16, %v1950_v6 }
 0x12a   : > { %v1260_v19 = vpop.f32.mrb[23].mxu0  ;;  %v1596_v20 = vpop.f32.mrb[23].mxu1  ;;  %v2038_v21 = vrot.slane %v2037_v11, 1  ;;  %v1605_v28 = vadd.f32 %v2940_v31, %v3386_v33  ;;  %v1954_v37 = vmax.f32 %v1602_v17, 0.0  ;;  %v1269_v40 = vadd.f32 %v2856_v30, %v3386_v33 }
 0x12b   : > { %v1868_v24 = vmax.f32 %v1258_v14, 0.0  ;;  %v1952_v27 = vmax.f32 %v1594_v18, 0.0  ;;  %v2044_v35 = vadd.f32 %v2043_v22, %v1867_v15  ;;  %v1261_v36 = vadd.f32 %v1260_v19, %v3386_v33 }
 0x12c   : > { %v2039_v34 = vadd.f32 %v2038_v21, %v2037_v11  ;;  %v2188_v38 = vadd.f32 %v2187_v26, %v1951_v25  ;;  %v1597_v41 = vadd.f32 %v1596_v20, %v3386_v33  ;;  %v1870_v43 = vmax.f32 %v1266_v23, 0.0 }
 0x12d   : > { %v2045_v44 = vadd.f32 %v2044_v35, %v1868_v24  ;;  %v1869_v46 = vmax.f32 %v1261_v36, 0.0  ;;  %v1955_v49 = vmax.f32 %v1605_v28, 0.0  ;;  %v1871_v57 = vmax.f32 %v1269_v40, 0.0 }
 0x12e   : > { %v2313_v42 = vsub.f32 %v2039_v34, %v3434_v63  ;;  %v3447_v48 = vadd.f32 %v2188_v38, %v1952_v27  ;;  %v1953_v50 = vmax.f32 %v1597_v41, 0.0 }
 0x12f   : > { %v2859_v47 = vpop.f32.mrb[24].mxu0  ;;  %v2943_v32 = vpop.f32.mrb[24].mxu1  ;;  %v2046_v54 = vrot.slane %v2045_v44, 4  ;;  %v2052_v55 = vadd.f32 %v1870_v43, %v1869_v46 }
 0x130   : > { %v1273_v51 = vpop.f32.mrb[25].mxu0  ;;  %v1609_v52 = vpop.f32.mrb[25].mxu1  ;;  %v2337_v53 = vmul.f32 0.020408163, %v2313_v42  ;;  %v2196_v58 = vadd.f32 %v1954_v37, %v1953_v50  ;;  %v1618_v8 = vadd.f32 %v2943_v32, %v3386_v33  ;;  %v1282_v10 = vadd.f32 %v2859_v47, %v3386_v33 }
 0x131   : > { %v2860_v56 = vpop.f32.mrb[26].mxu0  ;;  %v2944_v59 = vpop.f32.mrb[26].mxu1  ;;  %v2047_v0 = vadd.f32 %v2046_v54, %v2045_v44  ;;  %v1274_v1 = vadd.f32 %v1273_v51, %v3386_v33  ;;  %v2053_v3 = vadd.f32 %v2052_v55, %v1871_v57  ;;  %v1610_v4 = vadd.f32 %v1609_v52, %v3386_v33 }
 0x132   : > { %v1276_v60 = vpop.f32.mrb[27].mxu0  ;;  %v2384_v62 = vrot.slane %v2337_v53, 7  ;;  %v1612_v2 = vpop.f32.mrb[27].mxu1  ;;  %v2197_v5 = vadd.f32 %v2196_v58, %v1955_v49  ;;  %v1285_v17 = vadd.f32 %v2860_v56, %v3386_v33  ;;  %v1621_v18 = vadd.f32 %v2944_v59, %v3386_v33 }
 0x133   : > { %v2048_v7 = vrot.slane %v2047_v0, 2  ;;  %v1872_v9 = vmax.f32 %v1274_v1, 0.0  ;;  %v1956_v11 = vmax.f32 %v1610_v4, 0.0  ;;  %v1277_v12 = vadd.f32 %v1276_v60, %v3386_v33 }
 0x134   : > { %v3452_v6 = vsel %vm2385_vm2, %v2384_v62, %v2336_v61  ;;  %v1613_v30 = vadd.f32 %v1612_v2, %v3386_v33  ;;  %v1958_v23 = vmax.f32 %v1618_v8, 0.0  ;;  %v1874_v28 = vmax.f32 %v1282_v10, 0.0 }
 0x135   : > { %v2049_v13 = vadd.f32 %v2048_v7, %v2047_v0  ;;  %v2054_v14 = vadd.f32 %v2053_v3, %v1872_v9  ;;  %v2198_v16 = vadd.f32 %v2197_v5, %v1956_v11  ;;  %v1873_v19 = vmax.f32 %v1277_v12, 0.0 }
 0x136   : > { %v1957_v24 = vmax.f32 %v1613_v30, 0.0  ;;  %v1875_v40 = vmax.f32 %v1285_v17, 0.0  ;;  %v1959_v41 = vmax.f32 %v1621_v18, 0.0 }
 0x137   : > { %v2863_v31 = vpop.f32.mrb[28].mxu0  ;;  %v2947_v15 = vpop.f32.mrb[28].mxu1  ;;  %v2050_v22 = vrot.slane %v2049_v13, 1  ;;  %v2055_v29 = vadd.f32 %v2054_v14, %v1873_v19 }
 0x138   : > { %v1289_v20 = vpop.f32.mrb[29].mxu0  ;;  %v1625_v21 = vpop.f32.mrb[29].mxu1  ;;  %v1634_v25 = vadd.f32 %v2947_v15, %v3386_v33  ;;  %v2199_v38 = vadd.f32 %v2198_v16, %v1957_v24  ;;  %v1298_v47 = vadd.f32 %v2863_v31, %v3386_v33 }
 0x139   : > { %v2864_v26 = vpop.f32.mrb[30].mxu0  ;;  %v2948_v27 = vpop.f32.mrb[30].mxu1  ;;  %v1626_v34 = vadd.f32 %v1625_v21, %v3386_v33  ;;  %v2051_v37 = vadd.f32 %v2050_v22, %v2049_v13  ;;  %v2056_v42 = vadd.f32 %v2055_v29, %v1874_v28  ;;  %v1290_v43 = vadd.f32 %v1289_v20, %v3386_v33 }
 0x13a   : > { %v1292_v35 = vpop.f32.mrb[31].mxu0  ;;  %v1628_v36 = vpop.f32.mrb[31].mxu1  ;;  %v2200_v46 = vadd.f32 %v2199_v38, %v1958_v23  ;;  %v1962_v32 = vmax.f32 %v1634_v25, 0.0  ;;  %v1301_v55 = vadd.f32 %v2864_v26, %v3386_v33  ;;  %v1637_v56 = vadd.f32 %v2948_v27, %v3386_v33 }
 0x13b   : > { %v2314_v44 = vsub.f32 %v2051_v37, %v3434_v63  ;;  %v2057_v49 = vadd.f32 %v2056_v42, %v1875_v40  ;;  %v1960_v50 = vmax.f32 %v1626_v34, 0.0  ;;  %v1293_v51 = vadd.f32 %v1292_v35, %v3386_v33 }
 0x13c   : > { %v1629_v52 = vadd.f32 %v1628_v36, %v3386_v33  ;;  %v3467_v54 = vadd.f32 %v2200_v46, %v1959_v41  ;;  %v1876_v60 = vmax.f32 %v1290_v43, 0.0  ;;  %v1878_v5 = vmax.f32 %v1298_v47, 0.0 }
 0x13d   : > { %v2338_v53 = vmul.f32 0.020408163, %v2314_v44  ;;  %v2058_v59 = vrot.slane %v2057_v49, 4  ;;  %v1877_v61 = vmax.f32 %v1293_v51, 0.0  ;;  %v1879_v12 = vmax.f32 %v1301_v55, 0.0 }
 0x13e   : > { %v1961_v62 = vmax.f32 %v1629_v52, 0.0  ;;  %v1963_v13 = vmax.f32 %v1637_v56, 0.0 }
 0x13f   : > { %v2867_v57 = vpop.f32.mrb[32].mxu0  ;;  %v2951_v58 = vpop.f32.mrb[32].mxu1  ;;  %v2387_v1 = vrot.slane %v2338_v53, 6  ;;  %v2059_v4 = vadd.f32 %v2058_v59, %v2057_v49  ;;  %v2064_v7 = vadd.f32 %v1877_v61, %v1876_v60 }
 0x140   : > { %v1305_v0 = vpop.f32.mrb[33].mxu0  ;;  %v1641_v2 = vpop.f32.mrb[33].mxu1  ;;  %v2208_v8 = vadd.f32 %v1961_v62, %v1960_v50  ;;  %v1314_v17 = vadd.f32 %v2867_v57, %v3386_v33  ;;  %v1650_v18 = vadd.f32 %v2951_v58, %v3386_v33 }
 0x141   : > { %v2868_v3 = vpop.f32.mrb[34].mxu0  ;;  %v2952_v9 = vpop.f32.mrb[34].mxu1  ;;  %v3473_v11 = vsel %vm2388_vm3, %v2387_v1, %v3452_v6  ;;  %v2060_v30 = vrot.slane %v2059_v4, 2  ;;  %v2065_v31 = vadd.f32 %v2064_v7, %v1878_v5  ;;  %v1306_v16 = vadd.f32 %v1305_v0, %v3386_v33 }
 0x142   : > { %v1308_v10 = vpop.f32.mrb[35].mxu0  ;;  %v1644_v14 = vpop.f32.mrb[35].mxu1  ;;  %v2209_v15 = vadd.f32 %v2208_v8, %v1962_v32  ;;  %v1642_v19 = vadd.f32 %v1641_v2, %v3386_v33  ;;  %v2166_v6 = vrot.slane %v3406_v39, 4  ;;  %v1317_v25 = vadd.f32 %v2868_v3, %v3386_v33 }
 0x143   : > { %v2061_v20 = vadd.f32 %v2060_v30, %v2059_v4  ;;  %v1880_v21 = vmax.f32 %v1306_v16, 0.0  ;;  %v2066_v22 = vadd.f32 %v2065_v31, %v1879_v12  ;;  %v1309_v34 = vadd.f32 %v1308_v10, %v3386_v33 }
 0x144   : > { %v2210_v23 = vadd.f32 %v2209_v15, %v1963_v13  ;;  %v1964_v24 = vmax.f32 %v1642_v19, 0.0  ;;  %v1645_v35 = vadd.f32 %v1644_v14, %v3386_v33  ;;  %v1882_v38 = vmax.f32 %v1314_v17, 0.0 }
 0x145   : > { %v2062_v28 = vrot.slane %v2061_v20, 1  ;;  %v2067_v29 = vadd.f32 %v2066_v22, %v1880_v21  ;;  %v1966_v40 = vmax.f32 %v1650_v18, 0.0  ;;  %v1653_v42 = vadd.f32 %v2952_v9, %v3386_v33 }
 0x146   : > { %v2211_v41 = vadd.f32 %v2210_v23, %v1964_v24  ;;  %v1881_v47 = vmax.f32 %v1309_v34, 0.0  ;;  %v1965_v32 = vmax.f32 %v1645_v35, 0.0  ;;  %v1883_v52 = vmax.f32 %v1317_v25, 0.0 }
 0x147   : > { %v2871_v26 = vpop.f32.mrb[36].mxu0  ;;  %v2955_v27 = vpop.f32.mrb[36].mxu1  ;;  %v2063_v46 = vadd.f32 %v2062_v28, %v2061_v20  ;;  %v1967_v61 = vmax.f32 %v1653_v42, 0.0 }
 0x148   : > { %v1321_v36 = vpop.f32.mrb[37].mxu0  ;;  %v1657_v37 = vpop.f32.mrb[37].mxu1  ;;  %v1330_v53 = vadd.f32 %v2871_v26, %v3386_v33  ;;  %v1666_v55 = vadd.f32 %v2955_v27, %v3386_v33  ;;  %v2068_v58 = vadd.f32 %v2067_v29, %v1881_v47  ;;  %v2212_v59 = vadd.f32 %v2211_v41, %v1965_v32 }
 0x149   : > { %v2872_v43 = vpop.f32.mrb[38].mxu0  ;;  %v2956_v44 = vpop.f32.mrb[38].mxu1  ;;  %v1322_v49 = vadd.f32 %v1321_v36, %v3386_v33  ;;  %v1658_v56 = vadd.f32 %v1657_v37, %v3386_v33  ;;  %v2315_v57 = vsub.f32 %v2063_v46, %v3434_v63 }
 0x14a   : > { %v1324_v50 = vpop.f32.mrb[39].mxu0  ;;  %v1660_v51 = vpop.f32.mrb[39].mxu1  ;;  %v1333_v0 = vadd.f32 %v2872_v43, %v3386_v33  ;;  %v1669_v1 = vadd.f32 %v2956_v44, %v3386_v33  ;;  %v2069_v3 = vadd.f32 %v2068_v58, %v1882_v38  ;;  %v2213_v4 = vadd.f32 %v2212_v59, %v1966_v40 }
 0x14b   : > { %v1884_v60 = vmax.f32 %v1322_v49, 0.0  ;;  %v1968_v62 = vmax.f32 %v1658_v56, 0.0  ;;  %v2339_v2 = vmul.f32 0.020408163, %v2315_v57  ;;  %v1886_v7 = vmax.f32 %v1330_v53, 0.0 }
 0x14c   : > { %v1970_v8 = vmax.f32 %v1666_v55, 0.0  ;;  %v1887_v10 = vmax.f32 %v1333_v0, 0.0  ;;  %v2070_v30 = vrot.slane %v2069_v3, 4  ;;  %v2214_v31 = vrot.slane %v2213_v4, 4 }
 0x14d   : > { %v2076_v5 = vadd.f32 %v1884_v60, %v1883_v52  ;;  %v2220_v9 = vadd.f32 %v1968_v62, %v1967_v61  ;;  %v2390_v14 = vrot.slane %v2339_v2, 5  ;;  %v1325_v15 = vadd.f32 %v1324_v50, %v3386_v33 }
 0x14e   : > { %v1971_v18 = vmax.f32 %v1669_v1, 0.0  ;;  %v1661_v19 = vadd.f32 %v1660_v51, %v3386_v33  ;;  %v2071_v25 = vadd.f32 %v2070_v30, %v2069_v3  ;;  %v2215_v26 = vadd.f32 %v2214_v31, %v2213_v4 }
 0x14f   : > { %v2875_v12 = vpop.f32.mrb[40].mxu0  ;;  %v2959_v13 = vpop.f32.mrb[40].mxu1  ;;  %v3497_v24 = vsel %vm2391_vm4, %v2390_v14, %v3473_v11  ;;  %v1885_v27 = vmax.f32 %v1325_v15, 0.0 }
 0x150   : > { %v1337_v16 = vpop.f32.mrb[41].mxu0  ;;  %v1673_v17 = vpop.f32.mrb[41].mxu1  ;;  %v1346_v20 = vadd.f32 %v2875_v12, %v3386_v33  ;;  %v1682_v21 = vadd.f32 %v2959_v13, %v3386_v33  ;;  %v1969_v34 = vmax.f32 %v1661_v19, 0.0  ;;  %v2072_v38 = vrot.slane %v2071_v25, 2 }
 0x151   : > { %v2876_v22 = vpop.f32.mrb[42].mxu0  ;;  %v2960_v23 = vpop.f32.mrb[42].mxu1  ;;  %v1338_v37 = vadd.f32 %v1337_v16, %v3386_v33  ;;  %v2216_v40 = vrot.slane %v2215_v26, 2  ;;  %v2077_v41 = vadd.f32 %v2076_v5, %v1885_v27  ;;  %v1674_v42 = vadd.f32 %v1673_v17, %v3386_v33 }
 0x152   : > { %v1340_v28 = vpop.f32.mrb[43].mxu0  ;;  %v1676_v29 = vpop.f32.mrb[43].mxu1  ;;  %v1890_v35 = vmax.f32 %v1346_v20, 0.0  ;;  %v1974_v36 = vmax.f32 %v1682_v21, 0.0  ;;  %v2221_v43 = vadd.f32 %v2220_v9, %v1969_v34  ;;  %v1349_v11 = vadd.f32 %v2876_v22, %v3386_v33 }
 0x153   : > { %v1888_v44 = vmax.f32 %v1338_v37, 0.0  ;;  %v1685_v46 = vadd.f32 %v2960_v23, %v3386_v33  ;;  %v2073_v47 = vadd.f32 %v2072_v38, %v2071_v25  ;;  %v2217_v32 = vadd.f32 %v2216_v40, %v2215_v26 }
 0x154   : > { %v2078_v49 = vadd.f32 %v2077_v41, %v1886_v7  ;;  %v1972_v50 = vmax.f32 %v1674_v42, 0.0  ;;  %v2222_v51 = vadd.f32 %v2221_v43, %v1970_v8  ;;  %v1891_v52 = vmax.f32 %v1349_v11, 0.0 }
 0x155   : > { %v1975_v53 = vmax.f32 %v1685_v46, 0.0  ;;  %v1341_v55 = vadd.f32 %v1340_v28, %v3386_v33  ;;  %v2074_v58 = vrot.slane %v2073_v47, 1  ;;  %v2218_v59 = vrot.slane %v2217_v32, 1 }
 0x156   : > { %v2079_v60 = vadd.f32 %v2078_v49, %v1887_v10  ;;  %v1677_v61 = vadd.f32 %v1676_v29, %v3386_v33  ;;  %v2223_v1 = vadd.f32 %v2222_v51, %v1971_v18  ;;  %v2088_v2 = vadd.f32 %v1891_v52, %v1890_v35 }
 0x157   : > { %v2879_v56 = vpop.f32.mrb[44].mxu0  ;;  %v2963_v57 = vpop.f32.mrb[44].mxu1  ;;  %v2232_v3 = vadd.f32 %v1975_v53, %v1974_v36  ;;  %v1889_v4 = vmax.f32 %v1341_v55, 0.0  ;;  %v2075_v8 = vadd.f32 %v2074_v58, %v2073_v47  ;;  %v2219_v9 = vadd.f32 %v2218_v59, %v2217_v32 }
 0x158   : > { %v1353_v62 = vpop.f32.mrb[45].mxu0  ;;  %v1689_v0 = vpop.f32.mrb[45].mxu1  ;;  %v2080_v12 = vadd.f32 %v2079_v60, %v1888_v44  ;;  %v1973_v13 = vmax.f32 %v1677_v61, 0.0  ;;  %v2224_v31 = vadd.f32 %v2223_v1, %v1972_v50  ;;  %v1362_v15 = vadd.f32 %v2879_v56, %v3386_v33 }
 0x159   : > { %v2880_v5 = vpop.f32.mrb[46].mxu0  ;;  %v2964_v7 = vpop.f32.mrb[46].mxu1  ;;  %v1698_v10 = vadd.f32 %v2963_v57, %v3386_v33  ;;  %v1354_v16 = vadd.f32 %v1353_v62, %v3386_v33  ;;  %v2178_v17 = vrot.slane %v3423_v45, 4  ;;  %v2316_v18 = vsub.f32 %v2075_v8, %v3434_v63 }
 0x15a   : > { %v1356_v14 = vpop.f32.mrb[47].mxu0  ;;  %v1692_v30 = vpop.f32.mrb[47].mxu1  ;;  %v2081_v19 = vadd.f32 %v2080_v12, %v1889_v4  ;;  %v1690_v20 = vadd.f32 %v1689_v0, %v3386_v33  ;;  %v2328_v21 = vsub.f32 %v2219_v9, %v3434_v63  ;;  %v2225_v22 = vadd.f32 %v2224_v31, %v1973_v13 }
 0x15b   : > { %v1894_v23 = vmax.f32 %v1362_v15, 0.0  ;;  %v1892_v25 = vmax.f32 %v1354_v16, 0.0  ;;  %v2340_v26 = vmul.f32 0.020408163, %v2316_v18  ;;  %v1978_v28 = vmax.f32 %v1698_v10, 0.0 }
 0x15c   : > { %v2082_v27 = vrot.slane %v2081_v19, 4  ;;  %v1976_v29 = vmax.f32 %v1690_v20, 0.0  ;;  %v2226_v34 = vrot.slane %v2225_v22, 4  ;;  %v1365_v36 = vadd.f32 %v2880_v5, %v3386_v33 }
 0x15d   : > { %v2089_v35 = vadd.f32 %v2088_v2, %v1892_v25  ;;  %v1701_v37 = vadd.f32 %v2964_v7, %v3386_v33  ;;  %v2393_v41 = vrot.slane %v2340_v26, 4  ;;  %v1357_v44 = vadd.f32 %v1356_v14, %v3386_v33 }
 0x15e   : > { %v2083_v42 = vadd.f32 %v2082_v27, %v2081_v19  ;;  %v2233_v43 = vadd.f32 %v2232_v3, %v1976_v29  ;;  %v3515_v47 = vmul.f32 0.020408163, %v2328_v21  ;;  %v2227_v32 = vadd.f32 %v2226_v34, %v2225_v22 }
 0x15f   : > { %v2883_v38 = vpop.f32.mrb[48].mxu0  ;;  %v2967_v40 = vpop.f32.mrb[48].mxu1  ;;  %v1895_v49 = vmax.f32 %v1365_v36, 0.0  ;;  %v1693_v50 = vadd.f32 %v1692_v30, %v3386_v33  ;;  %v3520_v53 = vsel %vm2394_vm5, %v2393_v41, %v3497_v24  ;;  %v1893_v56 = vmax.f32 %v1357_v44, 0.0 }
 0x160   : > { %v1369_v11 = vpop.f32.mrb[49].mxu0  ;;  %v1705_v46 = vpop.f32.mrb[49].mxu1  ;;  %v2084_v55 = vrot.slane %v2083_v42, 2  ;;  %v1378_v57 = vadd.f32 %v2883_v38, %v3386_v33  ;;  %v2228_v60 = vrot.slane %v2227_v32, 2  ;;  %v1979_v61 = vmax.f32 %v1701_v37, 0.0 }
 0x161   : > { %v2884_v51 = vpop.f32.mrb[50].mxu0  ;;  %v2968_v52 = vpop.f32.mrb[50].mxu1  ;;  %v1977_v62 = vmax.f32 %v1693_v50, 0.0  ;;  %v1370_v0 = vadd.f32 %v1369_v11, %v3386_v33  ;;  %v2090_v2 = vadd.f32 %v2089_v35, %v1893_v56  ;;  %v1714_v3 = vadd.f32 %v2967_v40, %v3386_v33 }
 0x162   : > { %v1372_v58 = vpop.f32.mrb[51].mxu0  ;;  %v1708_v59 = vpop.f32.mrb[51].mxu1  ;;  %v2085_v1 = vadd.f32 %v2084_v55, %v2083_v42  ;;  %v1706_v4 = vadd.f32 %v1705_v46, %v3386_v33  ;;  %v2229_v24 = vadd.f32 %v2228_v60, %v2227_v32  ;;  %v1898_v7 = vmax.f32 %v1378_v57, 0.0 }
 0x163   : > { %v2234_v5 = vadd.f32 %v2233_v43, %v1977_v62  ;;  %v1896_v8 = vmax.f32 %v1370_v0, 0.0  ;;  %v2091_v12 = vadd.f32 %v2090_v2, %v1894_v23  ;;  %v1381_v14 = vadd.f32 %v2884_v51, %v3386_v33 }
 0x164   : > { %v2086_v9 = vrot.slane %v2085_v1, 1  ;;  %v1980_v13 = vmax.f32 %v1706_v4, 0.0  ;;  %v2230_v30 = vrot.slane %v2229_v24, 1  ;;  %v1717_v15 = vadd.f32 %v2968_v52, %v3386_v33 }
 0x165   : > { %v2235_v31 = vadd.f32 %v2234_v5, %v1978_v28  ;;  %v1373_v10 = vadd.f32 %v1372_v58, %v3386_v33  ;;  %v1982_v20 = vmax.f32 %v1714_v3, 0.0  ;;  %v2092_v21 = vadd.f32 %v2091_v12, %v1895_v49 }
 0x166   : > { %v2087_v19 = vadd.f32 %v2086_v9, %v2085_v1  ;;  %v1709_v22 = vadd.f32 %v1708_v59, %v3386_v33  ;;  %v2231_v27 = vadd.f32 %v2230_v30, %v2229_v24  ;;  %v1899_v29 = vmax.f32 %v1381_v14, 0.0 }
 0x167   : > { %v2887_v16 = vpop.f32.mrb[52].mxu0  ;;  %v2971_v18 = vpop.f32.mrb[52].mxu1  ;;  %v2236_v23 = vadd.f32 %v2235_v31, %v1979_v61  ;;  %v1897_v34 = vmax.f32 %v1373_v10, 0.0  ;;  %v2093_v37 = vadd.f32 %v2092_v21, %v1896_v8  ;;  %v1983_v11 = vmax.f32 %v1717_v15, 0.0 }
 0x168   : > { %v1385_v25 = vpop.f32.mrb[53].mxu0  ;;  %v1721_v26 = vpop.f32.mrb[53].mxu1  ;;  %v2317_v28 = vsub.f32 %v2087_v19, %v3434_v63  ;;  %v1981_v38 = vmax.f32 %v1709_v22, 0.0  ;;  %v3532_v40 = vadd.f32 %v2887_v16, %v3386_v33  ;;  %v2329_v43 = vsub.f32 %v2231_v27, %v3434_v63 }
 0x169   : > { %v2888_v35 = vpop.f32.mrb[54].mxu0  ;;  %v2972_v36 = vpop.f32.mrb[54].mxu1  ;;  %v2237_v44 = vadd.f32 %v2236_v23, %v1980_v13  ;;  %v2100_v46 = vadd.f32 %v1898_v7, %v1897_v34  ;;  %v2094_v49 = vrot.slane %v2093_v37, 4  ;;  %v3536_v51 = vadd.f32 %v2971_v18, %v3386_v33 }
 0x16a   : > { %v1388_v41 = vpop.f32.mrb[55].mxu0  ;;  %v1724_v42 = vpop.f32.mrb[55].mxu1  ;;  %v2341_v32 = vmul.f32 0.020408163, %v2317_v28  ;;  %v2244_v50 = vadd.f32 %v1982_v20, %v1981_v38  ;;  %v2353_v52 = vmul.f32 0.020408163, %v2329_v43  ;;  %v1386_v57 = vadd.f32 %v1385_v25, %v3386_v33 }
 0x16b   : > { %v2238_v55 = vrot.slane %v2237_v44, 4  ;;  %v1902_v56 = vmax.f32 %v3532_v40, 0.0  ;;  %v2095_v59 = vadd.f32 %v2094_v49, %v2093_v37  ;;  %v2101_v60 = vadd.f32 %v2100_v46, %v1899_v29 }
 0x16c   : > { %v2396_v58 = vrot.slane %v2341_v32, 3  ;;  %v1722_v61 = vadd.f32 %v1721_v26, %v3386_v33  ;;  %v2419_v62 = vrot.slane %v2353_v52, 7  ;;  %v1900_v1 = vmax.f32 %v1386_v57, 0.0 }
 0x16d   : > { %v2239_v0 = vadd.f32 %v2238_v55, %v2237_v44  ;;  %v2245_v2 = vadd.f32 %v2244_v50, %v1983_v11  ;;  %v2096_v5 = vrot.slane %v2095_v59, 2  ;;  %v1397_v8 = vadd.f32 %v2888_v35, %v3386_v33 }
 0x16e   : > { %v3543_v24 = vsel %vm2397_vm6, %v2396_v58, %v3520_v53  ;;  %v1984_v7 = vmax.f32 %v1722_v61, 0.0  ;;  %v3548_v13 = vsel %vm2385_vm2, %v2419_v62, %v3515_v47  ;;  %v2102_v30 = vadd.f32 %v2101_v60, %v1900_v1 }
 0x16f   : > { %v2891_v3 = vpop.f32.mrb[56].mxu0  ;;  %v2975_v4 = vpop.f32.mrb[56].mxu1  ;;  %v2240_v14 = vrot.slane %v2239_v0, 2  ;;  %v1733_v31 = vadd.f32 %v2972_v36, %v3386_v33  ;;  %v2097_v16 = vadd.f32 %v2096_v5, %v2095_v59  ;;  %v1986_v53 = vmax.f32 %v3536_v51, 0.0 }
 0x170   : > { %v1401_v9 = vpop.f32.mrb[57].mxu0  ;;  %v1737_v12 = vpop.f32.mrb[57].mxu1  ;;  %v2246_v18 = vadd.f32 %v2245_v2, %v1984_v7  ;;  %v1389_v19 = vadd.f32 %v1388_v41, %v3386_v33  ;;  %v1903_v25 = vmax.f32 %v1397_v8, 0.0  ;;  %v1725_v47 = vadd.f32 %v1724_v42, %v3386_v33 }
 0x171   : > { %v2892_v15 = vpop.f32.mrb[58].mxu0  ;;  %v2976_v10 = vpop.f32.mrb[58].mxu1  ;;  %v2241_v22 = vadd.f32 %v2240_v14, %v2239_v0  ;;  %v1410_v26 = vadd.f32 %v2891_v3, %v3386_v33  ;;  %v2098_v27 = vrot.slane %v2097_v16, 1  ;;  %v1746_v29 = vadd.f32 %v2975_v4, %v3386_v33 }
 0x172   : > { %v1404_v20 = vpop.f32.mrb[59].mxu0  ;;  %v1740_v21 = vpop.f32.mrb[59].mxu1  ;;  %v1901_v23 = vmax.f32 %v1389_v19, 0.0  ;;  %v1402_v34 = vadd.f32 %v1401_v9, %v3386_v33  ;;  %v1987_v36 = vmax.f32 %v1733_v31, 0.0  ;;  %v1985_v28 = vmax.f32 %v1725_v47, 0.0 }
 0x173   : > { %v2242_v35 = vrot.slane %v2241_v22, 1  ;;  %v1738_v37 = vadd.f32 %v1737_v12, %v3386_v33  ;;  %v2099_v38 = vadd.f32 %v2098_v27, %v2097_v16  ;;  %v1906_v41 = vmax.f32 %v1410_v26, 0.0 }
 0x174   : > { %v2103_v40 = vadd.f32 %v2102_v30, %v1901_v23  ;;  %v1990_v43 = vmax.f32 %v1746_v29, 0.0  ;;  %v2247_v11 = vadd.f32 %v2246_v18, %v1985_v28  ;;  %v1904_v42 = vmax.f32 %v1402_v34, 0.0 }
 0x175   : > { %v2243_v44 = vadd.f32 %v2242_v35, %v2241_v22  ;;  %v1413_v46 = vadd.f32 %v2892_v15, %v3386_v33  ;;  %v2318_v50 = vsub.f32 %v2099_v38, %v3434_v63  ;;  %v1749_v52 = vadd.f32 %v2976_v10, %v3386_v33 }
 0x176   : > { %v2104_v51 = vadd.f32 %v2103_v40, %v1902_v56  ;;  %v1405_v55 = vadd.f32 %v1404_v20, %v3386_v33  ;;  %v2248_v60 = vadd.f32 %v2247_v11, %v1986_v53  ;;  %v1988_v61 = vmax.f32 %v1738_v37, 0.0 }
 0x177   : > { %v2895_v32 = vpop.f32.mrb[60].mxu0  ;;  %v2979_v49 = vpop.f32.mrb[60].mxu1  ;;  %v2330_v59 = vsub.f32 %v2243_v44, %v3434_v63  ;;  %v1741_v62 = vadd.f32 %v1740_v21, %v3386_v33  ;;  %v2342_v2 = vmul.f32 0.020408163, %v2318_v50  ;;  %v1907_v4 = vmax.f32 %v1413_v46, 0.0 }
 0x178   : > { %v1417_v57 = vpop.f32.mrb[61].mxu0  ;;  %v1753_v58 = vpop.f32.mrb[61].mxu1  ;;  %v2105_v3 = vadd.f32 %v2104_v51, %v1903_v25  ;;  %v1905_v5 = vmax.f32 %v1405_v55, 0.0  ;;  %v2249_v9 = vadd.f32 %v2248_v60, %v1987_v36  ;;  %v3565_v14 = vadd.f32 %v2895_v32, %v3386_v33 }
 0x179   : > { %v2896_v0 = vpop.f32.mrb[62].mxu0  ;;  %v2980_v1 = vpop.f32.mrb[62].mxu1  ;;  %v2354_v8 = vmul.f32 0.020408163, %v2330_v59  ;;  %v1989_v12 = vmax.f32 %v1741_v62, 0.0  ;;  %v2399_v30 = vrot.slane %v2342_v2, 2  ;;  %v1762_v19 = vadd.f32 %v2979_v49, %v3386_v33 }
 0x17a   : > { %v1420_v7 = vpop.f32.mrb[63].mxu0  ;;  %v1756_v56 = vpop.f32.mrb[63].mxu1  ;;  %v2106_v31 = vrot.slane %v2105_v3, 4  ;;  %v1991_v15 = vmax.f32 %v1749_v52, 0.0  ;;  %v2112_v10 = vadd.f32 %v1905_v5, %v1904_v42  ;;  %v2250_v53 = vrot.slane %v2249_v9, 4 }
 0x17b   : > { %v2421_v16 = vrot.slane %v2354_v8, 6  ;;  %v2256_v18 = vadd.f32 %v1989_v12, %v1988_v61  ;;  %v3570_v20 = vsel %vm2400_vm7, %v2399_v30, %v3543_v24  ;;  %v1910_v25 = vmax.f32 %v3565_v14, 0.0 }
 0x17c   : > { %v2107_v21 = vadd.f32 %v2106_v31, %v2105_v3  ;;  %v2113_v22 = vadd.f32 %v2112_v10, %v1906_v41  ;;  %v2251_v26 = vadd.f32 %v2250_v53, %v2249_v9  ;;  %v1418_v23 = vadd.f32 %v1417_v57, %v3386_v33 }
 0x17d   : > { %v3575_v47 = vsel %vm2388_vm3, %v2421_v16, %v3548_v13  ;;  %v2257_v27 = vadd.f32 %v2256_v18, %v1990_v43  ;;  %v1754_v28 = vadd.f32 %v1753_v58, %v3386_v33  ;;  %v1429_v24 = vadd.f32 %v2896_v0, %v3386_v33 }
 0x17e   : > { %v2108_v35 = vrot.slane %v2107_v21, 2  ;;  %v2114_v36 = vadd.f32 %v2113_v22, %v1907_v4  ;;  %v2252_v40 = vrot.slane %v2251_v26, 2  ;;  %v1908_v41 = vmax.f32 %v1418_v23, 0.0 }
 0x17f   : > { %v2899_v29 = vpop.f32.mrb[64].mxu0  ;;  %v2983_v34 = vpop.f32.mrb[64].mxu1  ;;  %v2258_v44 = vadd.f32 %v2257_v27, %v1991_v15  ;;  %v1765_v13 = vadd.f32 %v2980_v1, %v3386_v33  ;;  %v1994_v46 = vmax.f32 %v1762_v19, 0.0  ;;  %v1992_v32 = vmax.f32 %v1754_v28, 0.0 }
 0x180   : > { %v1433_v37 = vpop.f32.mrb[65].mxu0  ;;  %v1769_v38 = vpop.f32.mrb[65].mxu1  ;;  %v2109_v43 = vadd.f32 %v2108_v35, %v2107_v21  ;;  %v1421_v49 = vadd.f32 %v1420_v7, %v3386_v33  ;;  %v2253_v52 = vadd.f32 %v2252_v40, %v2251_v26  ;;  %v2115_v55 = vadd.f32 %v2114_v36, %v1908_v41 }
 0x181   : > { %v2900_v11 = vpop.f32.mrb[66].mxu0  ;;  %v2984_v42 = vpop.f32.mrb[66].mxu1  ;;  %v1911_v57 = vmax.f32 %v1429_v24, 0.0  ;;  %v1757_v58 = vadd.f32 %v1756_v56, %v3386_v33  ;;  %v2259_v60 = vadd.f32 %v2258_v44, %v1992_v32  ;;  %v3584_v62 = vadd.f32 %v2899_v29, %v3386_v33 }
 0x182   : > { %v1436_v50 = vpop.f32.mrb[67].mxu0  ;;  %v1772_v51 = vpop.f32.mrb[67].mxu1  ;;  %v2110_v59 = vrot.slane %v2109_v43, 1  ;;  %v1909_v61 = vmax.f32 %v1421_v49, 0.0  ;;  %v2254_v0 = vrot.slane %v2253_v52, 1  ;;  %v1995_v1 = vmax.f32 %v1765_v13, 0.0 }
 0x183   : > { %v1993_v2 = vmax.f32 %v1757_v58, 0.0  ;;  %v1434_v3 = vadd.f32 %v1433_v37, %v3386_v33  ;;  %v3588_v7 = vadd.f32 %v2983_v34, %v3386_v33  ;;  %v1770_v8 = vadd.f32 %v1769_v38, %v3386_v33 }
 0x184   : > { %v2111_v4 = vadd.f32 %v2110_v59, %v2109_v43  ;;  %v2116_v5 = vadd.f32 %v2115_v55, %v1909_v61  ;;  %v2255_v56 = vadd.f32 %v2254_v0, %v2253_v52  ;;  %v1914_v12 = vmax.f32 %v3584_v62, 0.0 }
 0x185   : > { %v2260_v9 = vadd.f32 %v2259_v60, %v1993_v2  ;;  %v1912_v14 = vmax.f32 %v1434_v3, 0.0  ;;  %v1996_v16 = vmax.f32 %v1770_v8, 0.0  ;;  %v1445_v53 = vadd.f32 %v2900_v11, %v3386_v33 }
 0x186   : > { %v2319_v15 = vsub.f32 %v2111_v4, %v3434_v63  ;;  %v2117_v10 = vadd.f32 %v2116_v5, %v1910_v25  ;;  %v2331_v21 = vsub.f32 %v2255_v56, %v3434_v63  ;;  %v1781_v27 = vadd.f32 %v2984_v42, %v3386_v33 }
 0x187   : > { %v2903_v30 = vpop.f32.mrb[68].mxu0  ;;  %v2987_v31 = vpop.f32.mrb[68].mxu1  ;;  %v2261_v22 = vadd.f32 %v2260_v9, %v1994_v46  ;;  %v2124_v26 = vadd.f32 %v1912_v14, %v1911_v57  ;;  %v1998_v36 = vmax.f32 %v3588_v7, 0.0  ;;  %v2268_v28 = vadd.f32 %v1996_v16, %v1995_v1 }
 0x188   : > { %v1449_v18 = vpop.f32.mrb[69].mxu0  ;;  %v1785_v19 = vpop.f32.mrb[69].mxu1  ;;  %v2343_v34 = vmul.f32 0.020408163, %v2319_v15  ;;  %v2118_v35 = vrot.slane %v2117_v10, 4  ;;  %v1915_v40 = vmax.f32 %v1445_v53, 0.0  ;;  %v1437_v41 = vadd.f32 %v1436_v50, %v3386_v33 }
 0x189   : > { %v2904_v23 = vpop.f32.mrb[70].mxu0  ;;  %v2988_v29 = vpop.f32.mrb[70].mxu1  ;;  %v2355_v37 = vmul.f32 0.020408163, %v2331_v21  ;;  %v2262_v38 = vrot.slane %v2261_v22, 4  ;;  %v1999_v11 = vmax.f32 %v1781_v27, 0.0  ;;  %v1773_v42 = vadd.f32 %v1772_v51, %v3386_v33 }
 0x18a   : > { %v1452_v24 = vpop.f32.mrb[71].mxu0  ;;  %v1788_v25 = vpop.f32.mrb[71].mxu1  ;;  %v2402_v44 = vrot.slane %v2343_v34, 1  ;;  %v2119_v13 = vadd.f32 %v2118_v35, %v2117_v10  ;;  %v1913_v32 = vmax.f32 %v1437_v41, 0.0  ;;  %v1794_v49 = vadd.f32 %v2987_v31, %v3386_v33 }
 0x18b   : > { %v2423_v43 = vrot.slane %v2355_v37, 5  ;;  %v2263_v46 = vadd.f32 %v2262_v38, %v2261_v22  ;;  %v1997_v55 = vmax.f32 %v1773_v42, 0.0  ;;  %v1458_v57 = vadd.f32 %v2903_v30, %v3386_v33 }
 0x18c   : > { %v2404_v52 = vsel %vm2403_vm8, %v2402_v44, %v3570_v20  ;;  %v2120_v50 = vrot.slane %v2119_v13, 2  ;;  %v2125_v60 = vadd.f32 %v2124_v26, %v1913_v32  ;;  %v2002_v51 = vmax.f32 %v1794_v49, 0.0 }
 0x18d   : > { %2436 = vst [vmem:[%s3602_s30] sm:$0xff] %v2404_v52  ;;  %v3612_v58 = vsel %vm2391_vm4, %v2423_v43, %v3575_v47  ;;  %v2264_v59 = vrot.slane %v2263_v46, 2  ;;  %v2269_v1 = vadd.f32 %v2268_v28, %v1997_v55  ;;  %v1450_v2 = vadd.f32 %v1449_v18, %v3386_v33 }
 0x18e   : > { %v2121_v0 = vadd.f32 %v2120_v50, %v2119_v13  ;;  %v1786_v20 = vadd.f32 %v1785_v19, %v3386_v33  ;;  %v2126_v7 = vadd.f32 %v2125_v60, %v1914_v12  ;;  %v1461_v8 = vadd.f32 %v2904_v23, %v3386_v33 }
 0x18f   : > { %v2907_v61 = vpop.f32.mrb[72].mxu0  ;;  %v2991_v62 = vpop.f32.mrb[72].mxu1  ;;  %v2265_v5 = vadd.f32 %v2264_v59, %v2263_v46  ;;  %v1797_v47 = vadd.f32 %v2988_v29, %v3386_v33  ;;  %v2270_v14 = vadd.f32 %v2269_v1, %v1998_v36  ;;  %v1918_v30 = vmax.f32 %v1458_v57, 0.0 }
 0x190   : > { %v1465_v3 = vpop.f32.mrb[73].mxu0  ;;  %v1801_v4 = vpop.f32.mrb[73].mxu1  ;;  %v1916_v31 = vmax.f32 %v1450_v2, 0.0  ;;  %v2000_v15 = vmax.f32 %v1786_v20, 0.0  ;;  %v2127_v18 = vadd.f32 %v2126_v7, %v1915_v40  ;;  %v1919_v21 = vmax.f32 %v1461_v8, 0.0 }
 0x191   : > { %v2908_v56 = vpop.f32.mrb[74].mxu0  ;;  %v2992_v9 = vpop.f32.mrb[74].mxu1  ;;  %v2266_v53 = vrot.slane %v2265_v5, 1  ;;  %v2003_v19 = vmax.f32 %v1797_v47, 0.0  ;;  %v2122_v22 = vrot.slane %v2121_v0, 1  ;;  %v2271_v26 = vadd.f32 %v2270_v14, %v1999_v11 }
 0x192   : > { %v1468_v10 = vpop.f32.mrb[75].mxu0  ;;  %v1804_v16 = vpop.f32.mrb[75].mxu1  ;;  %v1453_v12 = vadd.f32 %v1452_v24, %v3386_v33  ;;  %v1789_v27 = vadd.f32 %v1788_v25, %v3386_v33  ;;  %v2128_v29 = vadd.f32 %v2127_v18, %v1916_v31  ;;  %v2136_v34 = vadd.f32 %v1919_v21, %v1918_v30 }
 0x193   : > { %v2267_v23 = vadd.f32 %v2266_v53, %v2265_v5  ;;  %v2280_v35 = vadd.f32 %v2003_v19, %v2002_v51  ;;  %v2190_v36 = vrot.slane %v3447_v48, 4  ;;  %v2272_v28 = vadd.f32 %v2271_v26, %v2000_v15 }
 0x194   : > { %v1917_v37 = vmax.f32 %v1453_v12, 0.0  ;;  %v2001_v38 = vmax.f32 %v1789_v27, 0.0  ;;  %v2202_v41 = vrot.slane %v3467_v54, 4  ;;  %v1474_v44 = vadd.f32 %v2907_v61, %v3386_v33 }
 0x195   : > { %v2332_v40 = vsub.f32 %v2267_v23, %v3434_v63  ;;  %v1466_v13 = vadd.f32 %v1465_v3, %v3386_v33  ;;  %v1810_v43 = vadd.f32 %v2991_v62, %v3386_v33  ;;  %v1802_v46 = vadd.f32 %v1801_v4, %v3386_v33 }
 0x196   : > { %v2129_v25 = vadd.f32 %v2128_v29, %v1917_v37  ;;  %v2273_v42 = vadd.f32 %v2272_v28, %v2001_v38  ;;  %v3627_v52 = vadd.f32 %v2122_v22, %v2121_v0  ;;  %v1922_v55 = vmax.f32 %v1474_v44, 0.0 }
 0x197   : > { %v2911_v24 = vpop.f32.mrb[76].mxu0  ;;  %v2995_v11 = vpop.f32.mrb[76].mxu1  ;;  %v2356_v50 = vmul.f32 0.020408163, %v2332_v40  ;;  %v1920_v57 = vmax.f32 %v1466_v13, 0.0  ;;  %v2004_v61 = vmax.f32 %v1802_v46, 0.0  ;;  %v1477_v1 = vadd.f32 %v2908_v56, %v3386_v33 }
 0x198   : > { %v1481_v32 = vpop.f32.mrb[77].mxu0  ;;  %v1817_v49 = vpop.f32.mrb[77].mxu1  ;;  %v2130_v60 = vrot.slane %v2129_v25, 4  ;;  %v2274_v51 = vrot.slane %v2273_v42, 4  ;;  %v1813_v62 = vadd.f32 %v2992_v9, %v3386_v33  ;;  %v1469_v4 = vadd.f32 %v1468_v10, %v3386_v33 }
 0x199   : > { %v2912_v59 = vpop.f32.mrb[78].mxu0  ;;  %v2996_v2 = vpop.f32.mrb[78].mxu1  ;;  %v2425_v3 = vrot.slane %v2356_v50, 4  ;;  %v2137_v5 = vadd.f32 %v2136_v34, %v1920_v57  ;;  %v2006_v47 = vmax.f32 %v1810_v43, 0.0  ;;  %v2281_v14 = vadd.f32 %v2280_v35, %v2004_v61 }
 0x19a   : > { %v1484_v20 = vpop.f32.mrb[79].mxu0  ;;  %v1820_v7 = vpop.f32.mrb[79].mxu1  ;;  %v2131_v0 = vadd.f32 %v2130_v60, %v2129_v25  ;;  %v2275_v8 = vadd.f32 %v2274_v51, %v2273_v42  ;;  %v1923_v31 = vmax.f32 %v1477_v1, 0.0  ;;  %v1921_v15 = vmax.f32 %v1469_v4, 0.0 }
 0x19b   : > { %v3634_v30 = vsel %vm2394_vm5, %v2425_v3, %v3612_v58  ;;  %v1805_v56 = vadd.f32 %v1804_v16, %v3386_v33  ;;  %v2007_v21 = vmax.f32 %v1813_v62, 0.0  ;;  %v1826_v9 = vadd.f32 %v2995_v11, %v3386_v33 }
 0x19c   : > { %v2132_v53 = vrot.slane %v2131_v0, 2  ;;  %v2276_v18 = vrot.slane %v2275_v8, 2  ;;  %v2138_v19 = vadd.f32 %v2137_v5, %v1921_v15  ;;  %v1482_v22 = vadd.f32 %v1481_v32, %v3386_v33 }
 0x19d   : > { %v2005_v10 = vmax.f32 %v1805_v56, 0.0  ;;  %v1818_v26 = vadd.f32 %v1817_v49, %v3386_v33  ;;  %v1490_v29 = vadd.f32 %v2911_v24, %v3386_v33  ;;  %v2010_v34 = vmax.f32 %v1826_v9, 0.0 }
 0x19e   : > { %v2133_v58 = vadd.f32 %v2132_v53, %v2131_v0  ;;  %v2277_v23 = vadd.f32 %v2276_v18, %v2275_v8  ;;  %v2139_v28 = vadd.f32 %v2138_v19, %v1922_v55  ;;  %v1924_v38 = vmax.f32 %v1482_v22, 0.0 }
 0x19f   : > { %v3640_v12 = vpop.f32.mrb[80].mxu0  ;;  %v2999_v27 = vpop.f32.mrb[80].mxu1  ;;  %v2282_v37 = vadd.f32 %v2281_v14, %v2005_v10  ;;  %v2008_v40 = vmax.f32 %v1818_v26, 0.0  ;;  %v1493_v42 = vadd.f32 %v2912_v59, %v3386_v33  ;;  %v1829_v43 = vadd.f32 %v2996_v2, %v3386_v33 }
 0x1a0   : > { %v1497_v16 = vpop.f32.mrb[81].mxu0  ;;  %v1833_v35 = vpop.f32.mrb[81].mxu1  ;;  %v2134_v11 = vrot.slane %v2133_v58, 1  ;;  %v2278_v25 = vrot.slane %v2277_v23, 1  ;;  %v2140_v50 = vadd.f32 %v2139_v28, %v1923_v31  ;;  %v1485_v24 = vadd.f32 %v1484_v20, %v3386_v33 }
 0x1a1   : > { %v2916_v44 = vpop.f32.mrb[82].mxu0  ;;  %v3000_v13 = vpop.f32.mrb[82].mxu1  ;;  %v2283_v49 = vadd.f32 %v2282_v37, %v2006_v47  ;;  %v1821_v57 = vadd.f32 %v1820_v7, %v3386_v33  ;;  %v2320_v55 = vsub.f32 %v3627_v52, %v3434_v63  ;;  %v1926_v61 = vmax.f32 %v1490_v29, 0.0 }
 0x1a2   : > { %v1500_v46 = vpop.f32.mrb[83].mxu0  ;;  %v1836_v32 = vpop.f32.mrb[83].mxu1  ;;  %v2135_v60 = vadd.f32 %v2134_v11, %v2133_v58  ;;  %v2279_v51 = vadd.f32 %v2278_v25, %v2277_v23  ;;  %v2141_v1 = vadd.f32 %v2140_v50, %v1924_v38  ;;  %v1925_v5 = vmax.f32 %v1485_v24, 0.0 }
 0x1a3   : > { %v2284_v3 = vadd.f32 %v2283_v49, %v2007_v21  ;;  %v2009_v59 = vmax.f32 %v1821_v57, 0.0  ;;  %v1927_v4 = vmax.f32 %v1493_v42, 0.0  ;;  %v2011_v0 = vmax.f32 %v1829_v43, 0.0 }
 0x1a4   : > { %v2321_v2 = vsub.f32 %v2135_v60, %v3434_v63  ;;  %v2333_v62 = vsub.f32 %v2279_v51, %v3434_v63  ;;  %v2142_v8 = vrot.slane %v2141_v1, 4  ;;  %v2148_v47 = vadd.f32 %v1926_v61, %v1925_v5 }
 0x1a5   : > { %v2285_v20 = vadd.f32 %v2284_v3, %v2008_v40  ;;  %v2292_v7 = vadd.f32 %v2010_v34, %v2009_v59  ;;  %v2167_v52 = vadd.f32 %v2166_v6, %v3406_v39  ;;  %v2344_v14 = vmul.f32 0.020408163, %v2320_v55 }
 0x1a6   : > { %v2345_v31 = vmul.f32 0.020408163, %v2321_v2  ;;  %v2357_v15 = vmul.f32 0.020408163, %v2333_v62  ;;  %v2143_v56 = vadd.f32 %v2142_v8, %v2141_v1  ;;  %v1498_v18 = vadd.f32 %v1497_v16, %v3386_v33 }
 0x1a7   : > { %v2286_v53 = vrot.slane %v2285_v20, 4  ;;  %v2149_v21 = vadd.f32 %v2148_v47, %v1927_v4  ;;  %v1834_v10 = vadd.f32 %v1833_v35, %v3386_v33  ;;  %v2293_v22 = vadd.f32 %v2292_v7, %v2011_v0 }
 0x1a8   : > { %v2405_v9 = vrot.slane %v2345_v31, 7  ;;  %v2427_v19 = vrot.slane %v2357_v15, 3  ;;  %v2144_v26 = vrot.slane %v2143_v56, 2  ;;  %v1842_v23 = vadd.f32 %v2999_v27, %v3386_v33 }
 0x1a9   : > { %v2287_v58 = vadd.f32 %v2286_v53, %v2285_v20  ;;  %v1928_v29 = vmax.f32 %v1498_v18, 0.0  ;;  %v2179_v39 = vadd.f32 %v2178_v17, %v3423_v45  ;;  %v2012_v16 = vmax.f32 %v1834_v10, 0.0 }
 0x1aa   : > { %v2406_v6 = vsel %vm2385_vm2, %v2405_v9, %v2344_v14  ;;  %v2428_v34 = vsel %vm2397_vm6, %v2427_v19, %v3634_v30  ;;  %v2191_v35 = vadd.f32 %v2190_v36, %v3447_v48  ;;  %v2145_v28 = vadd.f32 %v2144_v26, %v2143_v56 }
 0x1ab   : > { %v2288_v37 = vrot.slane %v2287_v58, 2  ;;  %v2150_v38 = vadd.f32 %v2149_v21, %v1928_v29  ;;  %v1506_v27 = vadd.f32 %v3640_v12, %v3386_v33  ;;  %v2294_v40 = vadd.f32 %v2293_v22, %v2012_v16 }
 0x1ac   : > { %v1501_v11 = vadd.f32 %v1500_v46, %v3386_v33  ;;  %v1837_v45 = vadd.f32 %v1836_v32, %v3386_v33  ;;  %v2203_v17 = vadd.f32 %v2202_v41, %v3467_v54  ;;  %v2146_v30 = vrot.slane %v2145_v28, 1 }
 0x1ad   : > { %v2289_v25 = vadd.f32 %v2288_v37, %v2287_v58  ;;  %v2014_v42 = vmax.f32 %v1842_v23, 0.0  ;;  %v1509_v48 = vadd.f32 %v2916_v44, %v3386_v33  ;;  %v1845_v36 = vadd.f32 %v3000_v13, %v3386_v33 }
 0x1ae   : > { %v1929_v43 = vmax.f32 %v1501_v11, 0.0  ;;  %v2013_v49 = vmax.f32 %v1837_v45, 0.0  ;;  %v2168_v50 = vrot.slane %v2167_v52, 2  ;;  %v2147_v12 = vadd.f32 %v2146_v30, %v2145_v28 }
 0x1af   : > { %v2290_v24 = vrot.slane %v2289_v25, 1  ;;  %v2180_v57 = vrot.slane %v2179_v39, 2  ;;  %v1930_v46 = vmax.f32 %v1506_v27, 0.0  ;;  %v2192_v60 = vrot.slane %v2191_v35, 2 }
 0x1b0   : > { %v2151_v55 = vadd.f32 %v2150_v38, %v1929_v43  ;;  %v2295_v32 = vadd.f32 %v2294_v40, %v2013_v49  ;;  %v2204_v51 = vrot.slane %v2203_v17, 2  ;;  %v2322_v54 = vsub.f32 %v2147_v12, %v3434_v63 }
 0x1b1   : > { %v2291_v41 = vadd.f32 %v2290_v24, %v2289_v25  ;;  %v1931_v61 = vmax.f32 %v1509_v48, 0.0  ;;  %v2015_v1 = vmax.f32 %v1845_v36, 0.0  ;;  %v2169_v5 = vadd.f32 %v2168_v50, %v2167_v52 }
 0x1b2   : > { %v2152_v3 = vadd.f32 %v2151_v55, %v1930_v46  ;;  %v2296_v44 = vadd.f32 %v2295_v32, %v2014_v42  ;;  %v2346_v33 = vmul.f32 0.020408163, %v2322_v54  ;;  %v2181_v59 = vadd.f32 %v2180_v57, %v2179_v39 }
 0x1b3   : > { %v2334_v13 = vsub.f32 %v2291_v41, %v3434_v63  ;;  %v2193_v4 = vadd.f32 %v2192_v60, %v2191_v35  ;;  %v2205_v20 = vadd.f32 %v2204_v51, %v2203_v17  ;;  %v2170_v14 = vrot.slane %v2169_v5, 1 }
 0x1b4   : > { %v2153_v2 = vadd.f32 %v2152_v3, %v1931_v61  ;;  %v2297_v62 = vadd.f32 %v2296_v44, %v2015_v1  ;;  %v2407_v0 = vrot.slane %v2346_v33, 6  ;;  %v2182_v56 = vrot.slane %v2181_v59, 1 }
 0x1b5   : > { %v2358_v8 = vmul.f32 0.020408163, %v2334_v13  ;;  %v2194_v52 = vrot.slane %v2193_v4, 1  ;;  %v2206_v9 = vrot.slane %v2205_v20, 1  ;;  %v2171_v22 = vadd.f32 %v2170_v14, %v2169_v5 }
 0x1b6   : > { %v2154_v47 = vrot.slane %v2153_v2, 4  ;;  %v2298_v7 = vrot.slane %v2297_v62, 4  ;;  %v2408_v31 = vsel %vm2388_vm3, %v2407_v0, %v2406_v6  ;;  %v2183_v26 = vadd.f32 %v2182_v56, %v2181_v59 }
 0x1b7   : > { %v2429_v15 = vrot.slane %v2358_v8, 2  ;;  %v2195_v29 = vadd.f32 %v2194_v52, %v2193_v4  ;;  %v2207_v39 = vadd.f32 %v2206_v9, %v2205_v20  ;;  %v2324_v6 = vsub.f32 %v2171_v22, %v3434_v63 }
 0x1b8   : > { %v2155_v53 = vadd.f32 %v2154_v47, %v2153_v2  ;;  %v2299_v18 = vadd.f32 %v2298_v7, %v2297_v62  ;;  %v2325_v28 = vsub.f32 %v2183_v26, %v3434_v63 }
 0x1b9   : > { %v2430_v21 = vsel %vm2400_vm7, %v2429_v15, %v2428_v34  ;;  %v2326_v27 = vsub.f32 %v2195_v29, %v3434_v63  ;;  %v2327_v34 = vsub.f32 %v2207_v39, %v3434_v63  ;;  %v2348_v45 = vmul.f32 0.020408163, %v2324_v6 }
 0x1ba   : > { %v2156_v19 = vrot.slane %v2155_v53, 2  ;;  %v2300_v10 = vrot.slane %v2299_v18, 2  ;;  %v2349_v17 = vmul.f32 0.020408163, %v2325_v28 }
 0x1bb   : > { %v2350_v42 = vmul.f32 0.020408163, %v2326_v27  ;;  %v2351_v48 = vmul.f32 0.020408163, %v2327_v34  ;;  %v2411_v49 = vrot.slane %v2348_v45, 4 }
 0x1bc   : > { %v2157_v58 = vadd.f32 %v2156_v19, %v2155_v53  ;;  %v2301_v23 = vadd.f32 %v2300_v10, %v2299_v18  ;;  %v2413_v50 = vrot.slane %v2349_v17, 3 }
 0x1bd   : > { %v2415_v57 = vrot.slane %v2350_v42, 2 }
 0x1be   : > { %v2158_v16 = vrot.slane %v2157_v58, 1  ;;  %v2302_v35 = vrot.slane %v2301_v23, 1 }
 0x1c0   : > { %v2159_v37 = vadd.f32 %v2158_v16, %v2157_v58  ;;  %v2303_v38 = vadd.f32 %v2302_v35, %v2301_v23 }
 0x1c2   : > { %v2323_v40 = vsub.f32 %v2159_v37, %v3434_v63  ;;  %v2335_v11 = vsub.f32 %v2303_v38, %v3434_v63  ;;  %v2417_v63 = vrot.slane %v2351_v48, 1 }
 0x1c4   : > { %v2347_v30 = vmul.f32 0.020408163, %v2323_v40  ;;  %v2359_v25 = vmul.f32 0.020408163, %v2335_v11 }
 0x1c6   : > { %v2409_v36 = vrot.slane %v2347_v30, 5  ;;  %v2431_v43 = vrot.slane %v2359_v25, 1 }
 0x1c8   : > { %v2410_v12 = vsel %vm2391_vm4, %v2409_v36, %v2408_v31  ;;  %v2432_v24 = vsel %vm2403_vm8, %v2431_v43, %v2430_v21 }
 0x1c9   : > { %v2412_v46 = vsel %vm2394_vm5, %v2411_v49, %v2410_v12  ;;  %2438 = vst [vmem:[%s3602_s30 + $0x10] sm:$0xff] %v2432_v24 }
 0x1ca   : > { %v2414_v55 = vsel %vm2397_vm6, %v2413_v50, %v2412_v46 }
 0x1cb   : > { %v2416_v32 = vsel %vm2400_vm7, %v2415_v57, %v2414_v55 }
 0x1cc   : > { %v2418_v60 = vsel %vm2403_vm8, %v2417_v63, %v2416_v32 }
 0x1cd   : > { %2437 = vst [vmem:[%s3602_s30 + $0x8] sm:$0xff] %v2418_v60 }
 0x1ce PF: > { %s13_s14 = sadd.s32 1, %s3153_s14   ;;  %s3706_s12 = smov %s3149_s13 }
 0x1cf   : > { %p10_p5 = scmp.ge.s32.totalorder %s13_s14, 4   ;;  %s3707_s13 = smov %s3709_s15 }
 0x1d1   :  { %12 = sbr.rel (!%p10_p5) target bundleno = 2 (0x2), region = 68 }

</bundles_post_ra>
